<compile_context>
chip_gen: v7x
topology: tpu7x:2x2x1
jax: 0.10.0
libtpu: 0.0.40
codegen_flags: <defaults>
</compile_context>

<pallas_src>
import numpy as np
import jax
import jax.numpy as jnp
from jax import lax
from jax.experimental import pallas as pl
from jax.experimental.pallas import tpu as pltpu


def _atan(x):
    # float32 Cephes-style arctan (Mosaic has no atan lowering).  Single divide,
    # implemented as EUP approximate reciprocal + one Newton-Raphson refinement
    # (~1 ulp) so it stays off the busy VPU slot.  den >= 1 in every branch.
    ax = jnp.abs(x)
    t3p8 = jnp.float32(2.414213562373095)   # tan(3*pi/8)
    tp8 = jnp.float32(0.4142135623730951)   # tan(pi/8)
    big = ax > t3p8
    mid = jnp.logical_and(ax > tp8, jnp.logical_not(big))
    num = jnp.where(big, jnp.float32(-1.0), jnp.where(mid, ax - 1.0, ax))
    den = jnp.where(big, ax, jnp.where(mid, ax + 1.0, jnp.float32(1.0)))
    r = pl.reciprocal(den, approx=True)
    r = r * (jnp.float32(2.0) - den * r)    # Newton step -> ~full f32 precision
    xr = num * r
    yoff = jnp.where(big, jnp.float32(np.pi / 2),
                     jnp.where(mid, jnp.float32(np.pi / 4), jnp.float32(0.0)))
    z = xr * xr
    poly = ((jnp.float32(8.05374449538e-2) * z - jnp.float32(1.38776856032e-1)) * z
            + jnp.float32(1.99777106478e-1)) * z - jnp.float32(3.33329491539e-1)
    res = yoff + poly * z * xr + xr
    return jnp.where(x < 0, -res, res)


def _tap_masks(H, W, K):
    """(K*K, H*W) float32 validity masks for a zero-padded "same" KxK conv."""
    P = K // 2
    hh, ww = np.meshgrid(np.arange(H), np.arange(W), indexing="ij")
    rows = []
    for dh in range(K):
        for dw in range(K):
            dy, dx = dh - P, dw - P
            ok = (hh + dy >= 0) & (hh + dy < H) & (ww + dx >= 0) & (ww + dx < W)
            rows.append(ok.reshape(-1))
    return np.stack(rows).astype(np.float32)


def _default_fold_batch():
    # v7x has 2 TensorCores: keep grid=(N,) "parallel" so each core takes one batch.
    # Single-TC v5e/v6e: fold the batch onto the lane axis (one grid step, 512-lane
    # MXU rhs, per-step overhead paid once).  Both paths are numerically identical.
    try:
        kind = jax.devices()[0].device_kind.lower()
    except Exception:
        return True
    return not any(tag in kind for tag in ("v7", "7x"))


def make_double_flow_call(N, Ch, H, W, hidden, K, fold_batch):
    HW = H * W
    KK = K * K
    P = K // 2
    B = N if fold_batch else 1            # batches folded per grid step
    L = B * HW                            # lane extent seen by the kernel
    steps = N // B
    assert HW % 128 == 0, "flattened spatial axis must be lane-aligned"

    def kernel(mask_ref, x1_ref, x2_ref, an_ref,
               w1a_ref, w1b_ref, w2a_ref, w2b_ref,
               y1_ref, y2_ref, ld_ref):
        masks = mask_ref[...]                                   # (KK, L), resident

        def conv(a, w_ref, cin):
            # KxK "same" conv as ONE MXU matmul.  Taps are register values built
            # with a lane roll (XLU) + boundary mask; no VMEM im2col scratch, no
            # store->reload chain.  An all-ones row carries the bias (the weight
            # matrix has the bias appended as its last column).
            rows = []
            for dh in range(K):
                for dw in range(K):
                    off = (dh - P) * W + (dw - P)
                    t = dh * K + dw
                    if off == 0:
                        rows.append(a)                          # center tap
                    else:
                        shifted = pltpu.roll(a, shift=(-off) % L, axis=1)
                        rows.append(shifted * masks[t:t + 1, :])
            rows.append(jnp.ones((1, L), jnp.float32))          # bias row
            col = jnp.concatenate(rows, axis=0)                 # (KK*cin + 1, L)
            return jnp.dot(w_ref[...], col, preferred_element_type=jnp.float32)

        # ActNorm apply (loc/scale are frozen one-time-init parameters).
        an = an_ref[...]                                        # (4, Ch, 1)
        a1 = an[1] * (x1_ref[...] + an[0])                      # (Ch, L)
        a2 = an[3] * (x2_ref[...] + an[2])

        # coupling 1: conditioner on a1, transforms a2 (scale|translation fused).
        hs1 = jnp.maximum(conv(a1, w1a_ref, Ch), 0.0)           # (hidden, L)
        st1 = conv(hs1, w1b_ref, hidden)                        # (2*Ch, L)
        log_e1 = jnp.float32(0.636) * _atan(st1[:Ch])           # clamp == 1.0
        y1 = a2 * jnp.exp(log_e1) + st1[Ch:]

        # coupling 2: conditioner on y1, transforms a1.
        hs2 = jnp.maximum(conv(y1, w2a_ref, Ch), 0.0)
        st2 = conv(hs2, w2b_ref, hidden)
        log_e2 = jnp.float32(0.636) * _atan(st2[:Ch])
        y2 = a1 * jnp.exp(log_e2) + st2[Ch:]

        y1_ref[...] = y1
        y2_ref[...] = y2

        # Per-batch log-det: one lane-dense (1,128) row per batch (B is static).
        log_e = log_e1 + log_e2
        for i in range(B):
            total = jnp.sum(log_e[:, i * HW:(i + 1) * HW])
            ld_ref[i] = jnp.full((1, 128), total, jnp.float32)

    act_spec = pl.BlockSpec((Ch, L), lambda b: (0, b))          # lane-block per step

    def const_spec(shape):
        zeros = (0,) * len(shape)
        return pl.BlockSpec(shape, lambda b, _z=zeros: _z)      # resident block

    in_specs = [
        const_spec((KK, L)),                                    # tap boundary masks
        act_spec, act_spec,                                     # x1, x2 (Ch, N*HW)
        const_spec((4, Ch, 1)),                                 # loc1|sc1|loc2|sc2
        const_spec((hidden, KK * Ch + 1)),                      # layer1.conv1 (w|b)
        const_spec((2 * Ch, KK * hidden + 1)),                  # layer1.conv2 s|t (w|b)
        const_spec((hidden, KK * Ch + 1)),                      # layer2.conv1 (w|b)
        const_spec((2 * Ch, KK * hidden + 1)),                  # layer2.conv2 s|t (w|b)
    ]
    out_specs = [
        act_spec,
        act_spec,
        pl.BlockSpec((B, 1, 128), lambda b: (b, 0, 0)),         # per-batch log-det row
    ]
    out_shape = [
        jax.ShapeDtypeStruct((Ch, N * HW), jnp.float32),
        jax.ShapeDtypeStruct((Ch, N * HW), jnp.float32),
        jax.ShapeDtypeStruct((N, 1, 128), jnp.float32),
    ]
    # VMEM footprint is tens of KB at this size on every generation (incl. v7x 64 MiB);
    # no vmem_limit_bytes or strip-tiling needed.
    return pl.pallas_call(
        kernel,
        out_shape=out_shape,
        grid=(steps,),
        in_specs=in_specs,
        out_specs=out_specs,
        compiler_params=pltpu.CompilerParams(
            dimension_semantics=("arbitrary",) if fold_batch else ("parallel",)),
    )


def init_params(key, C, hidden_ratio, K):
    Ch = C // 2
    hidden = int(Ch * hidden_ratio)
    ks = jax.random.split(key, 5)
    perm = jax.random.permutation(ks[0], C)          # ChannelPermute buffer

    def conv_init(k, cout, cin):
        kw, kb = jax.random.split(k)
        w = 0.2 * jax.random.normal(kw, (cout, cin, K, K), jnp.float32)
        b = 0.1 * jax.random.normal(kb, (cout,), jnp.float32)
        return w, b

    w11, b11 = conv_init(ks[1], hidden, Ch)          # layer1.conv1
    w12, b12 = conv_init(ks[2], 2 * Ch, hidden)      # layer1.conv2
    w21, b21 = conv_init(ks[3], hidden, Ch)          # layer2.conv1
    w22, b22 = conv_init(ks[4], 2 * Ch, hidden)      # layer2.conv2
    return dict(perm=perm, hidden=hidden,
                w11=w11, b11=b11, w12=w12, b12=b12,
                w21=w21, b21=b21, w22=w22, b22=b22)


def init_actnorm(x, params):
    """One-time data-dependent ActNorm init (PyTorch initialize(): per-channel
    mean / unbiased std of the permuted first batch), then frozen."""
    # TODO(synk): PyTorch's 'initialized' buffer mutation has no in-kernel
    # equivalent; init is done once here and loc/scale are passed in frozen.
    C = x.shape[1]
    xp = x[:, params["perm"], :, :]
    flat = jnp.transpose(xp, (1, 0, 2, 3)).reshape(C, -1)
    mean = jnp.mean(flat, axis=1)
    std = jnp.std(flat, axis=1, ddof=1)              # torch.std is unbiased
    return dict(loc=-mean, scale=1.0 / (std + 1e-6))


def double_flow_forward(x, params, actnorm, K, fold_batch=None):
    """x: (N, C, H, W) float32 NCHW (like PyTorch).  Returns (y NCHW, log_det (N,))."""
    N, C, H, W = x.shape
    Ch = C // 2
    HW = H * W
    hidden = params["hidden"]
    if fold_batch is None:
        fold_batch = _default_fold_batch()
    B = N if fold_batch else 1

    # ChannelPermute (cheap XLA channel gather), then NCHW -> (C, N*HW):
    # flattened spatial (and, when folded, batch) lands on the 128-lane axis.
    xp = x[:, params["perm"], :, :]
    xr = jnp.transpose(xp.reshape(N, C, HW), (1, 0, 2)).reshape(C, N * HW)
    x1, x2 = xr[:Ch], xr[Ch:]

    loc, scale = actnorm["loc"], actnorm["scale"]
    an = jnp.stack([loc[:Ch], scale[:Ch], loc[Ch:], scale[Ch:]]).reshape(4, Ch, 1)

    def wmat(w, b):
        # (O, I, K, K) -> (O, K*K*I) tap-major / channel-minor columns, bias appended
        # as the last column (contracted against the kernel's all-ones row).
        wm = jnp.transpose(w, (0, 2, 3, 1)).reshape(w.shape[0], K * K * w.shape[1])
        return jnp.concatenate([wm, b.reshape(-1, 1)], axis=1)

    w1a = wmat(params["w11"], params["b11"])
    w1b = wmat(params["w12"], params["b12"])         # fused scale|translation rows
    w2a = wmat(params["w21"], params["b21"])
    w2b = wmat(params["w22"], params["b22"])

    masks = jnp.asarray(np.tile(_tap_masks(H, W, K), (1, B)))   # (KK, B*HW)

    call = make_double_flow_call(N, Ch, H, W, hidden, K, fold_batch)
    y1, y2, ld = call(masks, x1, x2, an, w1a, w1b, w2a, w2b)

    def unfold(y):                                   # (Ch, N*HW) -> (N, Ch, HW)
        return jnp.transpose(y.reshape(Ch, N, HW), (1, 0, 2))

    y = jnp.concatenate([unfold(y1), unfold(y2)], axis=1).reshape(N, C, H, W)
    logdet_act = H * W * jnp.sum(jnp.log(jnp.abs(scale)))
    log_det = logdet_act + ld[:, 0, 0]
    return y, log_det


def ref_forward(x, params, K):
    """Pure-JAX reference mirroring the PyTorch module (for validation)."""
    N, C, H, W = x.shape
    Ch = C // 2
    xp = x[:, params["perm"], :, :]
    flat = jnp.transpose(xp, (1, 0, 2, 3)).reshape(C, -1)
    mean = jnp.mean(flat, axis=1)
    std = jnp.std(flat, axis=1, ddof=1)
    loc, scale = -mean, 1.0 / (std + 1e-6)
    logdet_act = H * W * jnp.sum(jnp.log(jnp.abs(scale)))
    a = scale.reshape(1, C, 1, 1) * (xp + loc.reshape(1, C, 1, 1))
    a1, a2 = a[:, :Ch], a[:, Ch:]

    def conv(xin, w, b):
        out = lax.conv_general_dilated(xin, w, (1, 1), "SAME",
                                       dimension_numbers=("NCHW", "OIHW", "NCHW"))
        return out + b.reshape(1, -1, 1, 1)

    def coupling(xin, w1, b1, w2, b2):
        hs = jax.nn.relu(conv(xin, w1, b1))
        out = conv(hs, w2, b2)
        return out[:, :Ch], out[:, Ch:]

    s1, t1 = coupling(a1, params["w11"], params["b11"], params["w12"], params["b12"])
    log_e1 = 0.636 * jnp.arctan(s1)
    y1 = a2 * jnp.exp(log_e1) + t1
    s2, t2 = coupling(y1, params["w21"], params["b21"], params["w22"], params["b22"])
    log_e2 = 0.636 * jnp.arctan(s2)
    y2 = a1 * jnp.exp(log_e2) + t2
    y = jnp.concatenate([y1, y2], axis=1)
    log_det = (logdet_act + jnp.sum(log_e1, axis=(1, 2, 3))
               + jnp.sum(log_e2, axis=(1, 2, 3)))
    return y, log_det


if __name__ == "__main__":
    key = jax.random.PRNGKey(0)
    kx, kp = jax.random.split(key)

    # DoubleFlow(in_channels=4, hidden_ratio=2.0, kernel_size=3) on (2, 4, 16, 16)
    N, C, H, W = 2, 4, 16, 16
    hidden_ratio, K = 2.0, 3

    x = jax.random.normal(kx, (N, C, H, W), jnp.float32)
    params = init_params(kp, C, hidden_ratio, K)
    actnorm = init_actnorm(x, params)                # one-time data-dependent init

    y, log_det = double_flow_forward(x, params, actnorm, K)
    jax.block_until_ready((y, log_det))

    y_exp, ld_exp = ref_forward(x, params, K)
    np.testing.assert_allclose(np.asarray(y), np.asarray(y_exp), rtol=2e-3, atol=2e-3)
    np.testing.assert_allclose(np.asarray(log_det), np.asarray(ld_exp), rtol=2e-3, atol=2e-3)

    print("KERNEL_OK")
</pallas_src>

<mosaic_0001>
module attributes {stable_mosaic.version = 11 : i64} {
  func.func @kernel(%arg0: i32, %arg1: memref<9x512xf32, #tpu.memory_space<vmem>>, %arg2: memref<2x512xf32, #tpu.memory_space<vmem>>, %arg3: memref<2x512xf32, #tpu.memory_space<vmem>>, %arg4: memref<4x2x1xf32, #tpu.memory_space<vmem>>, %arg5: memref<4x19xf32, #tpu.memory_space<vmem>>, %arg6: memref<4x37xf32, #tpu.memory_space<vmem>>, %arg7: memref<4x19xf32, #tpu.memory_space<vmem>>, %arg8: memref<4x37xf32, #tpu.memory_space<vmem>>, %arg9: memref<2x512xf32, #tpu.memory_space<vmem>>, %arg10: memref<2x512xf32, #tpu.memory_space<vmem>>, %arg11: memref<2x1x128xf32, #tpu.memory_space<vmem>>) attributes {dimension_semantics = [#tpu.dimension_semantics<arbitrary>], iteration_bounds = array<i64: 1>, scalar_prefetch = 0 : i64, scratch_operands = 0 : i64, tpu.core_type = #tpu.core_type<tc>, window_params = [{pipeline_mode = #tpu.pipeline_mode<synchronous>, transform_indices = @transform_0, window_bounds = array<i64: 9, 512>}, {transform_indices = @transform_1, window_bounds = array<i64: 2, 512>}, {transform_indices = @transform_2, window_bounds = array<i64: 2, 512>}, {pipeline_mode = #tpu.pipeline_mode<synchronous>, transform_indices = @transform_3, window_bounds = array<i64: 4, 2, 1>}, {pipeline_mode = #tpu.pipeline_mode<synchronous>, transform_indices = @transform_4, window_bounds = array<i64: 4, 19>}, {pipeline_mode = #tpu.pipeline_mode<synchronous>, transform_indices = @transform_5, window_bounds = array<i64: 4, 37>}, {pipeline_mode = #tpu.pipeline_mode<synchronous>, transform_indices = @transform_6, window_bounds = array<i64: 4, 19>}, {pipeline_mode = #tpu.pipeline_mode<synchronous>, transform_indices = @transform_7, window_bounds = array<i64: 4, 37>}, {transform_indices = @transform_8, window_bounds = array<i64: 2, 512>}, {transform_indices = @transform_9, window_bounds = array<i64: 2, 512>}, {transform_indices = @transform_10, window_bounds = array<i64: 2, 1, 128>}]} {
    %c0 = arith.constant 0 : index
    %c0_0 = arith.constant 0 : index
    %0 = vector.load %arg1[%c0, %c0_0] : memref<9x512xf32, #tpu.memory_space<vmem>>, vector<9x512xf32>
    %c0_1 = arith.constant 0 : index
    %c0_2 = arith.constant 0 : index
    %c0_3 = arith.constant 0 : index
    %1 = vector.load %arg4[%c0_1, %c0_2, %c0_3] : memref<4x2x1xf32, #tpu.memory_space<vmem>>, vector<4x2x1xf32>
    %2 = vector.extract_strided_slice %1 {offsets = [1, 0, 0], sizes = [1, 2, 1], strides = [1, 1, 1]} : vector<4x2x1xf32> to vector<1x2x1xf32>
    %3 = vector.shape_cast %2 : vector<1x2x1xf32> to vector<2x1xf32>
    %c0_4 = arith.constant 0 : index
    %c0_5 = arith.constant 0 : index
    %4 = vector.load %arg2[%c0_4, %c0_5] : memref<2x512xf32, #tpu.memory_space<vmem>>, vector<2x512xf32>
    %5 = vector.extract_strided_slice %1 {offsets = [0, 0, 0], sizes = [1, 2, 1], strides = [1, 1, 1]} : vector<4x2x1xf32> to vector<1x2x1xf32>
    %6 = vector.shape_cast %5 : vector<1x2x1xf32> to vector<2x1xf32>
    %7 = vector.broadcast %6 : vector<2x1xf32> to vector<2x512xf32>
    %8 = arith.addf %4, %7 : vector<2x512xf32>
    %9 = vector.broadcast %3 : vector<2x1xf32> to vector<2x512xf32>
    %10 = arith.mulf %9, %8 : vector<2x512xf32>
    %11 = vector.extract_strided_slice %1 {offsets = [3, 0, 0], sizes = [1, 2, 1], strides = [1, 1, 1]} : vector<4x2x1xf32> to vector<1x2x1xf32>
    %12 = vector.shape_cast %11 : vector<1x2x1xf32> to vector<2x1xf32>
    %c0_6 = arith.constant 0 : index
    %c0_7 = arith.constant 0 : index
    %13 = vector.load %arg3[%c0_6, %c0_7] : memref<2x512xf32, #tpu.memory_space<vmem>>, vector<2x512xf32>
    %14 = vector.extract_strided_slice %1 {offsets = [2, 0, 0], sizes = [1, 2, 1], strides = [1, 1, 1]} : vector<4x2x1xf32> to vector<1x2x1xf32>
    %15 = vector.shape_cast %14 : vector<1x2x1xf32> to vector<2x1xf32>
    %16 = vector.broadcast %15 : vector<2x1xf32> to vector<2x512xf32>
    %17 = arith.addf %13, %16 : vector<2x512xf32>
    %18 = vector.broadcast %12 : vector<2x1xf32> to vector<2x512xf32>
    %19 = arith.mulf %18, %17 : vector<2x512xf32>
    %c17_i32 = arith.constant 17 : i32
    %20 = tpu.dynamic_rotate %10 by %c17_i32 dim 1 : vector<2x512xf32>, i32 -> vector<2x512xf32>
    %21 = vector.extract_strided_slice %0 {offsets = [0, 0], sizes = [1, 512], strides = [1, 1]} : vector<9x512xf32> to vector<1x512xf32>
    %22 = vector.broadcast %21 : vector<1x512xf32> to vector<2x512xf32>
    %23 = arith.mulf %20, %22 : vector<2x512xf32>
    %c16_i32 = arith.constant 16 : i32
    %24 = tpu.dynamic_rotate %10 by %c16_i32 dim 1 : vector<2x512xf32>, i32 -> vector<2x512xf32>
    %25 = vector.extract_strided_slice %0 {offsets = [1, 0], sizes = [1, 512], strides = [1, 1]} : vector<9x512xf32> to vector<1x512xf32>
    %26 = vector.broadcast %25 : vector<1x512xf32> to vector<2x512xf32>
    %27 = arith.mulf %24, %26 : vector<2x512xf32>
    %c15_i32 = arith.constant 15 : i32
    %28 = tpu.dynamic_rotate %10 by %c15_i32 dim 1 : vector<2x512xf32>, i32 -> vector<2x512xf32>
    %29 = vector.extract_strided_slice %0 {offsets = [2, 0], sizes = [1, 512], strides = [1, 1]} : vector<9x512xf32> to vector<1x512xf32>
    %30 = vector.broadcast %29 : vector<1x512xf32> to vector<2x512xf32>
    %31 = arith.mulf %28, %30 : vector<2x512xf32>
    %c1_i32 = arith.constant 1 : i32
    %32 = tpu.dynamic_rotate %10 by %c1_i32 dim 1 : vector<2x512xf32>, i32 -> vector<2x512xf32>
    %33 = vector.extract_strided_slice %0 {offsets = [3, 0], sizes = [1, 512], strides = [1, 1]} : vector<9x512xf32> to vector<1x512xf32>
    %34 = vector.broadcast %33 : vector<1x512xf32> to vector<2x512xf32>
    %35 = arith.mulf %32, %34 : vector<2x512xf32>
    %c511_i32 = arith.constant 511 : i32
    %36 = tpu.dynamic_rotate %10 by %c511_i32 dim 1 : vector<2x512xf32>, i32 -> vector<2x512xf32>
    %37 = vector.extract_strided_slice %0 {offsets = [5, 0], sizes = [1, 512], strides = [1, 1]} : vector<9x512xf32> to vector<1x512xf32>
    %38 = vector.broadcast %37 : vector<1x512xf32> to vector<2x512xf32>
    %39 = arith.mulf %36, %38 : vector<2x512xf32>
    %c497_i32 = arith.constant 497 : i32
    %40 = tpu.dynamic_rotate %10 by %c497_i32 dim 1 : vector<2x512xf32>, i32 -> vector<2x512xf32>
    %41 = vector.extract_strided_slice %0 {offsets = [6, 0], sizes = [1, 512], strides = [1, 1]} : vector<9x512xf32> to vector<1x512xf32>
    %42 = vector.broadcast %41 : vector<1x512xf32> to vector<2x512xf32>
    %43 = arith.mulf %40, %42 : vector<2x512xf32>
    %c496_i32 = arith.constant 496 : i32
    %44 = tpu.dynamic_rotate %10 by %c496_i32 dim 1 : vector<2x512xf32>, i32 -> vector<2x512xf32>
    %45 = vector.extract_strided_slice %0 {offsets = [7, 0], sizes = [1, 512], strides = [1, 1]} : vector<9x512xf32> to vector<1x512xf32>
    %46 = vector.broadcast %45 : vector<1x512xf32> to vector<2x512xf32>
    %47 = arith.mulf %44, %46 : vector<2x512xf32>
    %c495_i32 = arith.constant 495 : i32
    %48 = tpu.dynamic_rotate %10 by %c495_i32 dim 1 : vector<2x512xf32>, i32 -> vector<2x512xf32>
    %49 = vector.extract_strided_slice %0 {offsets = [8, 0], sizes = [1, 512], strides = [1, 1]} : vector<9x512xf32> to vector<1x512xf32>
    %50 = vector.broadcast %49 : vector<1x512xf32> to vector<2x512xf32>
    %51 = arith.mulf %48, %50 : vector<2x512xf32>
    %cst = arith.constant 1.000000e+00 : f32
    %52 = vector.broadcast %cst : f32 to vector<1x512xf32>
    %53 = tpu.concatenate %23, %27, %31, %35, %10, %39, %43, %47, %51, %52 in 0 : vector<2x512xf32>, vector<2x512xf32>, vector<2x512xf32>, vector<2x512xf32>, vector<2x512xf32>, vector<2x512xf32>, vector<2x512xf32>, vector<2x512xf32>, vector<2x512xf32>, vector<1x512xf32> -> vector<19x512xf32>
    %c0_8 = arith.constant 0 : index
    %c0_9 = arith.constant 0 : index
    %54 = vector.load %arg5[%c0_8, %c0_9] : memref<4x19xf32, #tpu.memory_space<vmem>>, vector<4x19xf32>
    %cst_10 = arith.constant dense<0.000000e+00> : vector<4x512xf32>
    %55 = tpu.matmul %54, %53, %cst_10 {dimension_numbers = #tpu.dot_dimension_numbers<[1], [0], [0], [1], [0, 0, 1, 1], [], []>} : vector<4x19xf32>, vector<19x512xf32>, vector<4x512xf32> -> vector<4x512xf32>
    %cst_11 = arith.constant 0.000000e+00 : f32
    %56 = vector.broadcast %cst_11 : f32 to vector<4x512xf32>
    %57 = arith.maximumf %55, %56 : vector<4x512xf32>
    %c17_i32_12 = arith.constant 17 : i32
    %58 = tpu.dynamic_rotate %57 by %c17_i32_12 dim 1 : vector<4x512xf32>, i32 -> vector<4x512xf32>
    %59 = vector.extract_strided_slice %0 {offsets = [0, 0], sizes = [1, 512], strides = [1, 1]} : vector<9x512xf32> to vector<1x512xf32>
    %60 = vector.broadcast %59 : vector<1x512xf32> to vector<4x512xf32>
    %61 = arith.mulf %58, %60 : vector<4x512xf32>
    %c16_i32_13 = arith.constant 16 : i32
    %62 = tpu.dynamic_rotate %57 by %c16_i32_13 dim 1 : vector<4x512xf32>, i32 -> vector<4x512xf32>
    %63 = vector.extract_strided_slice %0 {offsets = [1, 0], sizes = [1, 512], strides = [1, 1]} : vector<9x512xf32> to vector<1x512xf32>
    %64 = vector.broadcast %63 : vector<1x512xf32> to vector<4x512xf32>
    %65 = arith.mulf %62, %64 : vector<4x512xf32>
    %c15_i32_14 = arith.constant 15 : i32
    %66 = tpu.dynamic_rotate %57 by %c15_i32_14 dim 1 : vector<4x512xf32>, i32 -> vector<4x512xf32>
    %67 = vector.extract_strided_slice %0 {offsets = [2, 0], sizes = [1, 512], strides = [1, 1]} : vector<9x512xf32> to vector<1x512xf32>
    %68 = vector.broadcast %67 : vector<1x512xf32> to vector<4x512xf32>
    %69 = arith.mulf %66, %68 : vector<4x512xf32>
    %c1_i32_15 = arith.constant 1 : i32
    %70 = tpu.dynamic_rotate %57 by %c1_i32_15 dim 1 : vector<4x512xf32>, i32 -> vector<4x512xf32>
    %71 = vector.extract_strided_slice %0 {offsets = [3, 0], sizes = [1, 512], strides = [1, 1]} : vector<9x512xf32> to vector<1x512xf32>
    %72 = vector.broadcast %71 : vector<1x512xf32> to vector<4x512xf32>
    %73 = arith.mulf %70, %72 : vector<4x512xf32>
    %c511_i32_16 = arith.constant 511 : i32
    %74 = tpu.dynamic_rotate %57 by %c511_i32_16 dim 1 : vector<4x512xf32>, i32 -> vector<4x512xf32>
    %75 = vector.extract_strided_slice %0 {offsets = [5, 0], sizes = [1, 512], strides = [1, 1]} : vector<9x512xf32> to vector<1x512xf32>
    %76 = vector.broadcast %75 : vector<1x512xf32> to vector<4x512xf32>
    %77 = arith.mulf %74, %76 : vector<4x512xf32>
    %c497_i32_17 = arith.constant 497 : i32
    %78 = tpu.dynamic_rotate %57 by %c497_i32_17 dim 1 : vector<4x512xf32>, i32 -> vector<4x512xf32>
    %79 = vector.extract_strided_slice %0 {offsets = [6, 0], sizes = [1, 512], strides = [1, 1]} : vector<9x512xf32> to vector<1x512xf32>
    %80 = vector.broadcast %79 : vector<1x512xf32> to vector<4x512xf32>
    %81 = arith.mulf %78, %80 : vector<4x512xf32>
    %c496_i32_18 = arith.constant 496 : i32
    %82 = tpu.dynamic_rotate %57 by %c496_i32_18 dim 1 : vector<4x512xf32>, i32 -> vector<4x512xf32>
    %83 = vector.extract_strided_slice %0 {offsets = [7, 0], sizes = [1, 512], strides = [1, 1]} : vector<9x512xf32> to vector<1x512xf32>
    %84 = vector.broadcast %83 : vector<1x512xf32> to vector<4x512xf32>
    %85 = arith.mulf %82, %84 : vector<4x512xf32>
    %c495_i32_19 = arith.constant 495 : i32
    %86 = tpu.dynamic_rotate %57 by %c495_i32_19 dim 1 : vector<4x512xf32>, i32 -> vector<4x512xf32>
    %87 = vector.extract_strided_slice %0 {offsets = [8, 0], sizes = [1, 512], strides = [1, 1]} : vector<9x512xf32> to vector<1x512xf32>
    %88 = vector.broadcast %87 : vector<1x512xf32> to vector<4x512xf32>
    %89 = arith.mulf %86, %88 : vector<4x512xf32>
    %cst_20 = arith.constant 1.000000e+00 : f32
    %90 = vector.broadcast %cst_20 : f32 to vector<1x512xf32>
    %91 = tpu.concatenate %61, %65, %69, %73, %57, %77, %81, %85, %89, %90 in 0 : vector<4x512xf32>, vector<4x512xf32>, vector<4x512xf32>, vector<4x512xf32>, vector<4x512xf32>, vector<4x512xf32>, vector<4x512xf32>, vector<4x512xf32>, vector<4x512xf32>, vector<1x512xf32> -> vector<37x512xf32>
    %c0_21 = arith.constant 0 : index
    %c0_22 = arith.constant 0 : index
    %92 = vector.load %arg6[%c0_21, %c0_22] : memref<4x37xf32, #tpu.memory_space<vmem>>, vector<4x37xf32>
    %cst_23 = arith.constant dense<0.000000e+00> : vector<4x512xf32>
    %93 = tpu.matmul %92, %91, %cst_23 {dimension_numbers = #tpu.dot_dimension_numbers<[1], [0], [0], [1], [0, 0, 1, 1], [], []>} : vector<4x37xf32>, vector<37x512xf32>, vector<4x512xf32> -> vector<4x512xf32>
    %94 = vector.extract_strided_slice %93 {offsets = [0, 0], sizes = [2, 512], strides = [1, 1]} : vector<4x512xf32> to vector<2x512xf32>
    %95 = math.absf %94 : vector<2x512xf32>
    %cst_24 = arith.constant 2.41421366 : f32
    %96 = vector.broadcast %cst_24 : f32 to vector<2x512xf32>
    %97 = arith.cmpf ogt, %95, %96 : vector<2x512xf32>
    %cst_25 = arith.constant 0.414213568 : f32
    %98 = vector.broadcast %cst_25 : f32 to vector<2x512xf32>
    %99 = arith.cmpf ogt, %95, %98 : vector<2x512xf32>
    %cst_26 = arith.constant dense<true> : vector<2x512xi1>
    %100 = arith.xori %97, %cst_26 : vector<2x512xi1>
    %101 = arith.andi %99, %100 : vector<2x512xi1>
    %cst_27 = arith.constant 1.000000e+00 : f32
    %102 = vector.broadcast %cst_27 : f32 to vector<2x512xf32>
    %103 = arith.subf %95, %102 : vector<2x512xf32>
    %104 = arith.select %101, %103, %95 : vector<2x512xi1>, vector<2x512xf32>
    %cst_28 = arith.constant -1.000000e+00 : f32
    %105 = vector.broadcast %cst_28 : f32 to vector<2x512xf32>
    %106 = arith.select %97, %105, %104 : vector<2x512xi1>, vector<2x512xf32>
    %cst_29 = arith.constant 1.000000e+00 : f32
    %107 = vector.broadcast %cst_29 : f32 to vector<2x512xf32>
    %108 = arith.addf %95, %107 : vector<2x512xf32>
    %cst_30 = arith.constant 1.000000e+00 : f32
    %109 = vector.broadcast %cst_30 : f32 to vector<2x512xf32>
    %110 = arith.select %101, %108, %109 : vector<2x512xi1>, vector<2x512xf32>
    %111 = arith.select %97, %95, %110 : vector<2x512xi1>, vector<2x512xf32>
    %112 = tpu.reciprocal %111 {approx = true} : vector<2x512xf32> -> vector<2x512xf32>
    %113 = arith.mulf %111, %112 : vector<2x512xf32>
    %cst_31 = arith.constant 2.000000e+00 : f32
    %114 = vector.broadcast %cst_31 : f32 to vector<2x512xf32>
    %115 = arith.subf %114, %113 : vector<2x512xf32>
    %116 = arith.mulf %112, %115 : vector<2x512xf32>
    %117 = arith.mulf %106, %116 : vector<2x512xf32>
    %cst_32 = arith.constant 0.785398185 : f32
    %cst_33 = arith.constant 0.000000e+00 : f32
    %118 = vector.broadcast %cst_32 : f32 to vector<2x512xf32>
    %119 = vector.broadcast %cst_33 : f32 to vector<2x512xf32>
    %120 = arith.select %101, %118, %119 : vector<2x512xi1>, vector<2x512xf32>
    %cst_34 = arith.constant 1.57079637 : f32
    %121 = vector.broadcast %cst_34 : f32 to vector<2x512xf32>
    %122 = arith.select %97, %121, %120 : vector<2x512xi1>, vector<2x512xf32>
    %123 = arith.mulf %117, %117 : vector<2x512xf32>
    %cst_35 = arith.constant 0.0805374458 : f32
    %124 = vector.broadcast %cst_35 : f32 to vector<2x512xf32>
    %125 = arith.mulf %124, %123 : vector<2x512xf32>
    %cst_36 = arith.constant 0.138776854 : f32
    %126 = vector.broadcast %cst_36 : f32 to vector<2x512xf32>
    %127 = arith.subf %125, %126 : vector<2x512xf32>
    %128 = arith.mulf %127, %123 : vector<2x512xf32>
    %cst_37 = arith.constant 0.199777111 : f32
    %129 = vector.broadcast %cst_37 : f32 to vector<2x512xf32>
    %130 = arith.addf %128, %129 : vector<2x512xf32>
    %131 = arith.mulf %130, %123 : vector<2x512xf32>
    %cst_38 = arith.constant 0.333329499 : f32
    %132 = vector.broadcast %cst_38 : f32 to vector<2x512xf32>
    %133 = arith.subf %131, %132 : vector<2x512xf32>
    %134 = arith.mulf %133, %123 : vector<2x512xf32>
    %135 = arith.mulf %134, %117 : vector<2x512xf32>
    %136 = arith.addf %122, %135 : vector<2x512xf32>
    %137 = arith.addf %136, %117 : vector<2x512xf32>
    %cst_39 = arith.constant 0.000000e+00 : f32
    %138 = vector.broadcast %cst_39 : f32 to vector<2x512xf32>
    %139 = arith.cmpf olt, %94, %138 : vector<2x512xf32>
    %cst_40 = arith.constant 0.000000e+00 : f32
    %140 = vector.broadcast %cst_40 : f32 to vector<2x512xf32>
    %141 = arith.subf %140, %137 : vector<2x512xf32>
    %142 = arith.select %139, %141, %137 : vector<2x512xi1>, vector<2x512xf32>
    %cst_41 = arith.constant 0.635999977 : f32
    %143 = vector.broadcast %cst_41 : f32 to vector<2x512xf32>
    %144 = arith.mulf %143, %142 : vector<2x512xf32>
    %145 = math.exp %144 : vector<2x512xf32>
    %146 = arith.mulf %19, %145 : vector<2x512xf32>
    %147 = vector.extract_strided_slice %93 {offsets = [2, 0], sizes = [2, 512], strides = [1, 1]} : vector<4x512xf32> to vector<2x512xf32>
    %148 = arith.addf %146, %147 : vector<2x512xf32>
    %c17_i32_42 = arith.constant 17 : i32
    %149 = tpu.dynamic_rotate %148 by %c17_i32_42 dim 1 : vector<2x512xf32>, i32 -> vector<2x512xf32>
    %150 = vector.extract_strided_slice %0 {offsets = [0, 0], sizes = [1, 512], strides = [1, 1]} : vector<9x512xf32> to vector<1x512xf32>
    %151 = vector.broadcast %150 : vector<1x512xf32> to vector<2x512xf32>
    %152 = arith.mulf %149, %151 : vector<2x512xf32>
    %c16_i32_43 = arith.constant 16 : i32
    %153 = tpu.dynamic_rotate %148 by %c16_i32_43 dim 1 : vector<2x512xf32>, i32 -> vector<2x512xf32>
    %154 = vector.extract_strided_slice %0 {offsets = [1, 0], sizes = [1, 512], strides = [1, 1]} : vector<9x512xf32> to vector<1x512xf32>
    %155 = vector.broadcast %154 : vector<1x512xf32> to vector<2x512xf32>
    %156 = arith.mulf %153, %155 : vector<2x512xf32>
    %c15_i32_44 = arith.constant 15 : i32
    %157 = tpu.dynamic_rotate %148 by %c15_i32_44 dim 1 : vector<2x512xf32>, i32 -> vector<2x512xf32>
    %158 = vector.extract_strided_slice %0 {offsets = [2, 0], sizes = [1, 512], strides = [1, 1]} : vector<9x512xf32> to vector<1x512xf32>
    %159 = vector.broadcast %158 : vector<1x512xf32> to vector<2x512xf32>
    %160 = arith.mulf %157, %159 : vector<2x512xf32>
    %c1_i32_45 = arith.constant 1 : i32
    %161 = tpu.dynamic_rotate %148 by %c1_i32_45 dim 1 : vector<2x512xf32>, i32 -> vector<2x512xf32>
    %162 = vector.extract_strided_slice %0 {offsets = [3, 0], sizes = [1, 512], strides = [1, 1]} : vector<9x512xf32> to vector<1x512xf32>
    %163 = vector.broadcast %162 : vector<1x512xf32> to vector<2x512xf32>
    %164 = arith.mulf %161, %163 : vector<2x512xf32>
    %c511_i32_46 = arith.constant 511 : i32
    %165 = tpu.dynamic_rotate %148 by %c511_i32_46 dim 1 : vector<2x512xf32>, i32 -> vector<2x512xf32>
    %166 = vector.extract_strided_slice %0 {offsets = [5, 0], sizes = [1, 512], strides = [1, 1]} : vector<9x512xf32> to vector<1x512xf32>
    %167 = vector.broadcast %166 : vector<1x512xf32> to vector<2x512xf32>
    %168 = arith.mulf %165, %167 : vector<2x512xf32>
    %c497_i32_47 = arith.constant 497 : i32
    %169 = tpu.dynamic_rotate %148 by %c497_i32_47 dim 1 : vector<2x512xf32>, i32 -> vector<2x512xf32>
    %170 = vector.extract_strided_slice %0 {offsets = [6, 0], sizes = [1, 512], strides = [1, 1]} : vector<9x512xf32> to vector<1x512xf32>
    %171 = vector.broadcast %170 : vector<1x512xf32> to vector<2x512xf32>
    %172 = arith.mulf %169, %171 : vector<2x512xf32>
    %c496_i32_48 = arith.constant 496 : i32
    %173 = tpu.dynamic_rotate %148 by %c496_i32_48 dim 1 : vector<2x512xf32>, i32 -> vector<2x512xf32>
    %174 = vector.extract_strided_slice %0 {offsets = [7, 0], sizes = [1, 512], strides = [1, 1]} : vector<9x512xf32> to vector<1x512xf32>
    %175 = vector.broadcast %174 : vector<1x512xf32> to vector<2x512xf32>
    %176 = arith.mulf %173, %175 : vector<2x512xf32>
    %c495_i32_49 = arith.constant 495 : i32
    %177 = tpu.dynamic_rotate %148 by %c495_i32_49 dim 1 : vector<2x512xf32>, i32 -> vector<2x512xf32>
    %178 = vector.extract_strided_slice %0 {offsets = [8, 0], sizes = [1, 512], strides = [1, 1]} : vector<9x512xf32> to vector<1x512xf32>
    %179 = vector.broadcast %178 : vector<1x512xf32> to vector<2x512xf32>
    %180 = arith.mulf %177, %179 : vector<2x512xf32>
    %cst_50 = arith.constant 1.000000e+00 : f32
    %181 = vector.broadcast %cst_50 : f32 to vector<1x512xf32>
    %182 = tpu.concatenate %152, %156, %160, %164, %148, %168, %172, %176, %180, %181 in 0 : vector<2x512xf32>, vector<2x512xf32>, vector<2x512xf32>, vector<2x512xf32>, vector<2x512xf32>, vector<2x512xf32>, vector<2x512xf32>, vector<2x512xf32>, vector<2x512xf32>, vector<1x512xf32> -> vector<19x512xf32>
    %c0_51 = arith.constant 0 : index
    %c0_52 = arith.constant 0 : index
    %183 = vector.load %arg7[%c0_51, %c0_52] : memref<4x19xf32, #tpu.memory_space<vmem>>, vector<4x19xf32>
    %cst_53 = arith.constant dense<0.000000e+00> : vector<4x512xf32>
    %184 = tpu.matmul %183, %182, %cst_53 {dimension_numbers = #tpu.dot_dimension_numbers<[1], [0], [0], [1], [0, 0, 1, 1], [], []>} : vector<4x19xf32>, vector<19x512xf32>, vector<4x512xf32> -> vector<4x512xf32>
    %cst_54 = arith.constant 0.000000e+00 : f32
    %185 = vector.broadcast %cst_54 : f32 to vector<4x512xf32>
    %186 = arith.maximumf %184, %185 : vector<4x512xf32>
    %c17_i32_55 = arith.constant 17 : i32
    %187 = tpu.dynamic_rotate %186 by %c17_i32_55 dim 1 : vector<4x512xf32>, i32 -> vector<4x512xf32>
    %188 = vector.extract_strided_slice %0 {offsets = [0, 0], sizes = [1, 512], strides = [1, 1]} : vector<9x512xf32> to vector<1x512xf32>
    %189 = vector.broadcast %188 : vector<1x512xf32> to vector<4x512xf32>
    %190 = arith.mulf %187, %189 : vector<4x512xf32>
    %c16_i32_56 = arith.constant 16 : i32
    %191 = tpu.dynamic_rotate %186 by %c16_i32_56 dim 1 : vector<4x512xf32>, i32 -> vector<4x512xf32>
    %192 = vector.extract_strided_slice %0 {offsets = [1, 0], sizes = [1, 512], strides = [1, 1]} : vector<9x512xf32> to vector<1x512xf32>
    %193 = vector.broadcast %192 : vector<1x512xf32> to vector<4x512xf32>
    %194 = arith.mulf %191, %193 : vector<4x512xf32>
    %c15_i32_57 = arith.constant 15 : i32
    %195 = tpu.dynamic_rotate %186 by %c15_i32_57 dim 1 : vector<4x512xf32>, i32 -> vector<4x512xf32>
    %196 = vector.extract_strided_slice %0 {offsets = [2, 0], sizes = [1, 512], strides = [1, 1]} : vector<9x512xf32> to vector<1x512xf32>
    %197 = vector.broadcast %196 : vector<1x512xf32> to vector<4x512xf32>
    %198 = arith.mulf %195, %197 : vector<4x512xf32>
    %c1_i32_58 = arith.constant 1 : i32
    %199 = tpu.dynamic_rotate %186 by %c1_i32_58 dim 1 : vector<4x512xf32>, i32 -> vector<4x512xf32>
    %200 = vector.extract_strided_slice %0 {offsets = [3, 0], sizes = [1, 512], strides = [1, 1]} : vector<9x512xf32> to vector<1x512xf32>
    %201 = vector.broadcast %200 : vector<1x512xf32> to vector<4x512xf32>
    %202 = arith.mulf %199, %201 : vector<4x512xf32>
    %c511_i32_59 = arith.constant 511 : i32
    %203 = tpu.dynamic_rotate %186 by %c511_i32_59 dim 1 : vector<4x512xf32>, i32 -> vector<4x512xf32>
    %204 = vector.extract_strided_slice %0 {offsets = [5, 0], sizes = [1, 512], strides = [1, 1]} : vector<9x512xf32> to vector<1x512xf32>
    %205 = vector.broadcast %204 : vector<1x512xf32> to vector<4x512xf32>
    %206 = arith.mulf %203, %205 : vector<4x512xf32>
    %c497_i32_60 = arith.constant 497 : i32
    %207 = tpu.dynamic_rotate %186 by %c497_i32_60 dim 1 : vector<4x512xf32>, i32 -> vector<4x512xf32>
    %208 = vector.extract_strided_slice %0 {offsets = [6, 0], sizes = [1, 512], strides = [1, 1]} : vector<9x512xf32> to vector<1x512xf32>
    %209 = vector.broadcast %208 : vector<1x512xf32> to vector<4x512xf32>
    %210 = arith.mulf %207, %209 : vector<4x512xf32>
    %c496_i32_61 = arith.constant 496 : i32
    %211 = tpu.dynamic_rotate %186 by %c496_i32_61 dim 1 : vector<4x512xf32>, i32 -> vector<4x512xf32>
    %212 = vector.extract_strided_slice %0 {offsets = [7, 0], sizes = [1, 512], strides = [1, 1]} : vector<9x512xf32> to vector<1x512xf32>
    %213 = vector.broadcast %212 : vector<1x512xf32> to vector<4x512xf32>
    %214 = arith.mulf %211, %213 : vector<4x512xf32>
    %c495_i32_62 = arith.constant 495 : i32
    %215 = tpu.dynamic_rotate %186 by %c495_i32_62 dim 1 : vector<4x512xf32>, i32 -> vector<4x512xf32>
    %216 = vector.extract_strided_slice %0 {offsets = [8, 0], sizes = [1, 512], strides = [1, 1]} : vector<9x512xf32> to vector<1x512xf32>
    %217 = vector.broadcast %216 : vector<1x512xf32> to vector<4x512xf32>
    %218 = arith.mulf %215, %217 : vector<4x512xf32>
    %cst_63 = arith.constant 1.000000e+00 : f32
    %219 = vector.broadcast %cst_63 : f32 to vector<1x512xf32>
    %220 = tpu.concatenate %190, %194, %198, %202, %186, %206, %210, %214, %218, %219 in 0 : vector<4x512xf32>, vector<4x512xf32>, vector<4x512xf32>, vector<4x512xf32>, vector<4x512xf32>, vector<4x512xf32>, vector<4x512xf32>, vector<4x512xf32>, vector<4x512xf32>, vector<1x512xf32> -> vector<37x512xf32>
    %c0_64 = arith.constant 0 : index
    %c0_65 = arith.constant 0 : index
    %221 = vector.load %arg8[%c0_64, %c0_65] : memref<4x37xf32, #tpu.memory_space<vmem>>, vector<4x37xf32>
    %cst_66 = arith.constant dense<0.000000e+00> : vector<4x512xf32>
    %222 = tpu.matmul %221, %220, %cst_66 {dimension_numbers = #tpu.dot_dimension_numbers<[1], [0], [0], [1], [0, 0, 1, 1], [], []>} : vector<4x37xf32>, vector<37x512xf32>, vector<4x512xf32> -> vector<4x512xf32>
    %223 = vector.extract_strided_slice %222 {offsets = [0, 0], sizes = [2, 512], strides = [1, 1]} : vector<4x512xf32> to vector<2x512xf32>
    %224 = math.absf %223 : vector<2x512xf32>
    %cst_67 = arith.constant 2.41421366 : f32
    %225 = vector.broadcast %cst_67 : f32 to vector<2x512xf32>
    %226 = arith.cmpf ogt, %224, %225 : vector<2x512xf32>
    %cst_68 = arith.constant 0.414213568 : f32
    %227 = vector.broadcast %cst_68 : f32 to vector<2x512xf32>
    %228 = arith.cmpf ogt, %224, %227 : vector<2x512xf32>
    %cst_69 = arith.constant dense<true> : vector<2x512xi1>
    %229 = arith.xori %226, %cst_69 : vector<2x512xi1>
    %230 = arith.andi %228, %229 : vector<2x512xi1>
    %cst_70 = arith.constant 1.000000e+00 : f32
    %231 = vector.broadcast %cst_70 : f32 to vector<2x512xf32>
    %232 = arith.subf %224, %231 : vector<2x512xf32>
    %233 = arith.select %230, %232, %224 : vector<2x512xi1>, vector<2x512xf32>
    %cst_71 = arith.constant -1.000000e+00 : f32
    %234 = vector.broadcast %cst_71 : f32 to vector<2x512xf32>
    %235 = arith.select %226, %234, %233 : vector<2x512xi1>, vector<2x512xf32>
    %cst_72 = arith.constant 1.000000e+00 : f32
    %236 = vector.broadcast %cst_72 : f32 to vector<2x512xf32>
    %237 = arith.addf %224, %236 : vector<2x512xf32>
    %cst_73 = arith.constant 1.000000e+00 : f32
    %238 = vector.broadcast %cst_73 : f32 to vector<2x512xf32>
    %239 = arith.select %230, %237, %238 : vector<2x512xi1>, vector<2x512xf32>
    %240 = arith.select %226, %224, %239 : vector<2x512xi1>, vector<2x512xf32>
    %241 = tpu.reciprocal %240 {approx = true} : vector<2x512xf32> -> vector<2x512xf32>
    %242 = arith.mulf %240, %241 : vector<2x512xf32>
    %cst_74 = arith.constant 2.000000e+00 : f32
    %243 = vector.broadcast %cst_74 : f32 to vector<2x512xf32>
    %244 = arith.subf %243, %242 : vector<2x512xf32>
    %245 = arith.mulf %241, %244 : vector<2x512xf32>
    %246 = arith.mulf %235, %245 : vector<2x512xf32>
    %cst_75 = arith.constant 0.785398185 : f32
    %cst_76 = arith.constant 0.000000e+00 : f32
    %247 = vector.broadcast %cst_75 : f32 to vector<2x512xf32>
    %248 = vector.broadcast %cst_76 : f32 to vector<2x512xf32>
    %249 = arith.select %230, %247, %248 : vector<2x512xi1>, vector<2x512xf32>
    %cst_77 = arith.constant 1.57079637 : f32
    %250 = vector.broadcast %cst_77 : f32 to vector<2x512xf32>
    %251 = arith.select %226, %250, %249 : vector<2x512xi1>, vector<2x512xf32>
    %252 = arith.mulf %246, %246 : vector<2x512xf32>
    %cst_78 = arith.constant 0.0805374458 : f32
    %253 = vector.broadcast %cst_78 : f32 to vector<2x512xf32>
    %254 = arith.mulf %253, %252 : vector<2x512xf32>
    %cst_79 = arith.constant 0.138776854 : f32
    %255 = vector.broadcast %cst_79 : f32 to vector<2x512xf32>
    %256 = arith.subf %254, %255 : vector<2x512xf32>
    %257 = arith.mulf %256, %252 : vector<2x512xf32>
    %cst_80 = arith.constant 0.199777111 : f32
    %258 = vector.broadcast %cst_80 : f32 to vector<2x512xf32>
    %259 = arith.addf %257, %258 : vector<2x512xf32>
    %260 = arith.mulf %259, %252 : vector<2x512xf32>
    %cst_81 = arith.constant 0.333329499 : f32
    %261 = vector.broadcast %cst_81 : f32 to vector<2x512xf32>
    %262 = arith.subf %260, %261 : vector<2x512xf32>
    %263 = arith.mulf %262, %252 : vector<2x512xf32>
    %264 = arith.mulf %263, %246 : vector<2x512xf32>
    %265 = arith.addf %251, %264 : vector<2x512xf32>
    %266 = arith.addf %265, %246 : vector<2x512xf32>
    %cst_82 = arith.constant 0.000000e+00 : f32
    %267 = vector.broadcast %cst_82 : f32 to vector<2x512xf32>
    %268 = arith.cmpf olt, %223, %267 : vector<2x512xf32>
    %cst_83 = arith.constant 0.000000e+00 : f32
    %269 = vector.broadcast %cst_83 : f32 to vector<2x512xf32>
    %270 = arith.subf %269, %266 : vector<2x512xf32>
    %271 = arith.select %268, %270, %266 : vector<2x512xi1>, vector<2x512xf32>
    %cst_84 = arith.constant 0.635999977 : f32
    %272 = vector.broadcast %cst_84 : f32 to vector<2x512xf32>
    %273 = arith.mulf %272, %271 : vector<2x512xf32>
    %274 = math.exp %273 : vector<2x512xf32>
    %275 = arith.mulf %10, %274 : vector<2x512xf32>
    %276 = vector.extract_strided_slice %222 {offsets = [2, 0], sizes = [2, 512], strides = [1, 1]} : vector<4x512xf32> to vector<2x512xf32>
    %277 = arith.addf %275, %276 : vector<2x512xf32>
    %c0_85 = arith.constant 0 : index
    %c0_86 = arith.constant 0 : index
    %278 = vector.load %arg9[%c0_85, %c0_86] : memref<2x512xf32, #tpu.memory_space<vmem>>, vector<2x512xf32>
    tpu.vector_store %arg9[%c0_85, %c0_86], %148 {strides = array<i32>} : memref<2x512xf32, #tpu.memory_space<vmem>>, vector<2x512xf32>,
    %c0_87 = arith.constant 0 : index
    %c0_88 = arith.constant 0 : index
    %279 = vector.load %arg10[%c0_87, %c0_88] : memref<2x512xf32, #tpu.memory_space<vmem>>, vector<2x512xf32>
    tpu.vector_store %arg10[%c0_87, %c0_88], %277 {strides = array<i32>} : memref<2x512xf32, #tpu.memory_space<vmem>>, vector<2x512xf32>,
    %280 = arith.addf %144, %273 : vector<2x512xf32>
    %281 = vector.extract_strided_slice %280 {offsets = [0, 0], sizes = [2, 256], strides = [1, 1]} : vector<2x512xf32> to vector<2x256xf32>
    %282 = vector.shape_cast %281 : vector<2x256xf32> to vector<1x2x256xf32>
    %cst_89 = arith.constant dense<0.000000e+00> : vector<1xf32>
    %283 = vector.multi_reduction <add>, %282, %cst_89 [1, 2] : vector<1x2x256xf32> to vector<1xf32>
    %284 = vector.shape_cast %283 : vector<1xf32> to vector<1x1x1xf32>
    %285 = vector.extract %284[0, 0, 0] : f32 from vector<1x1x1xf32>
    %286 = vector.broadcast %285 : f32 to vector<1x128xf32>
    %c0_90 = arith.constant 0 : index
    %c0_91 = arith.constant 0 : index
    %c0_92 = arith.constant 0 : index
    %287 = vector.load %arg11[%c0_90, %c0_91, %c0_92] : memref<2x1x128xf32, #tpu.memory_space<vmem>>, vector<1x1x128xf32>
    %288 = vector.shape_cast %287 : vector<1x1x128xf32> to vector<1x128xf32>
    %289 = vector.shape_cast %286 : vector<1x128xf32> to vector<1x1x128xf32>
    tpu.vector_store %arg11[%c0_90, %c0_91, %c0_92], %289 {strides = array<i32>} : memref<2x1x128xf32, #tpu.memory_space<vmem>>, vector<1x1x128xf32>,
    %290 = vector.extract_strided_slice %280 {offsets = [0, 256], sizes = [2, 256], strides = [1, 1]} : vector<2x512xf32> to vector<2x256xf32>
    %291 = vector.shape_cast %290 : vector<2x256xf32> to vector<1x2x256xf32>
    %cst_93 = arith.constant dense<0.000000e+00> : vector<1xf32>
    %292 = vector.multi_reduction <add>, %291, %cst_93 [1, 2] : vector<1x2x256xf32> to vector<1xf32>
    %293 = vector.shape_cast %292 : vector<1xf32> to vector<1x1x1xf32>
    %294 = vector.extract %293[0, 0, 0] : f32 from vector<1x1x1xf32>
    %295 = vector.broadcast %294 : f32 to vector<1x128xf32>
    %c1 = arith.constant 1 : index
    %c0_94 = arith.constant 0 : index
    %c0_95 = arith.constant 0 : index
    %296 = vector.load %arg11[%c1, %c0_94, %c0_95] : memref<2x1x128xf32, #tpu.memory_space<vmem>>, vector<1x1x128xf32>
    %297 = vector.shape_cast %296 : vector<1x1x128xf32> to vector<1x128xf32>
    %298 = vector.shape_cast %295 : vector<1x128xf32> to vector<1x1x128xf32>
    tpu.vector_store %arg11[%c1, %c0_94, %c0_95], %298 {strides = array<i32>} : memref<2x1x128xf32, #tpu.memory_space<vmem>>, vector<1x1x128xf32>,
    return
  }
  func.func @transform_0(%arg0: i32) -> (i32, i32) {
    %c0_i32 = arith.constant 0 : i32
    %c0_i32_0 = arith.constant 0 : i32
    %c0_i32_1 = arith.constant 0 : i32
    return %c0_i32, %c0_i32_0 : i32, i32
  }
  func.func @transform_1(%arg0: i32) -> (i32, i32) {
    %c0_i32 = arith.constant 0 : i32
    %c0_i32_0 = arith.constant 0 : i32
    return %c0_i32, %arg0 : i32, i32
  }
  func.func @transform_2(%arg0: i32) -> (i32, i32) {
    %c0_i32 = arith.constant 0 : i32
    %c0_i32_0 = arith.constant 0 : i32
    return %c0_i32, %arg0 : i32, i32
  }
  func.func @transform_3(%arg0: i32) -> (i32, i32, i32) {
    %c0_i32 = arith.constant 0 : i32
    %c0_i32_0 = arith.constant 0 : i32
    %c0_i32_1 = arith.constant 0 : i32
    %c0_i32_2 = arith.constant 0 : i32
    return %c0_i32, %c0_i32_0, %c0_i32_1 : i32, i32, i32
  }
  func.func @transform_4(%arg0: i32) -> (i32, i32) {
    %c0_i32 = arith.constant 0 : i32
    %c0_i32_0 = arith.constant 0 : i32
    %c0_i32_1 = arith.constant 0 : i32
    return %c0_i32, %c0_i32_0 : i32, i32
  }
  func.func @transform_5(%arg0: i32) -> (i32, i32) {
    %c0_i32 = arith.constant 0 : i32
    %c0_i32_0 = arith.constant 0 : i32
    %c0_i32_1 = arith.constant 0 : i32
    return %c0_i32, %c0_i32_0 : i32, i32
  }
  func.func @transform_6(%arg0: i32) -> (i32, i32) {
    %c0_i32 = arith.constant 0 : i32
    %c0_i32_0 = arith.constant 0 : i32
    %c0_i32_1 = arith.constant 0 : i32
    return %c0_i32, %c0_i32_0 : i32, i32
  }
  func.func @transform_7(%arg0: i32) -> (i32, i32) {
    %c0_i32 = arith.constant 0 : i32
    %c0_i32_0 = arith.constant 0 : i32
    %c0_i32_1 = arith.constant 0 : i32
    return %c0_i32, %c0_i32_0 : i32, i32
  }
  func.func @transform_8(%arg0: i32) -> (i32, i32) {
    %c0_i32 = arith.constant 0 : i32
    %c0_i32_0 = arith.constant 0 : i32
    return %c0_i32, %arg0 : i32, i32
  }
  func.func @transform_9(%arg0: i32) -> (i32, i32) {
    %c0_i32 = arith.constant 0 : i32
    %c0_i32_0 = arith.constant 0 : i32
    return %c0_i32, %arg0 : i32, i32
  }
  func.func @transform_10(%arg0: i32) -> (i32, i32, i32) {
    %c0_i32 = arith.constant 0 : i32
    %c0_i32_0 = arith.constant 0 : i32
    %c0_i32_1 = arith.constant 0 : i32
    return %arg0, %c0_i32, %c0_i32_0 : i32, i32, i32
  }
}

</mosaic_0001>

<bundles_post_ra>
// kernel: tpu_custom_call.1
= control target key start
LH: loop header
LB: loop body
LE: loop exit
PB: predicated region body
PF: predicated region fallthrough
CT: control target
= control target key end

     0   :  { %16 = vsyncpa [#allocation3], 0  ;;  %s4044_s0 = inlined_call_operand.hbm [shape: f32[9,512], index: 0, kind: input, shape index: {}]   ;;  %s4045_s1 = inlined_call_operand.vmem [shape: f32[2,512], index: 1, kind: input, shape index: {}]   ;;  %s4046_s2 = inlined_call_operand.vmem [shape: f32[2,512], index: 2, kind: input, shape index: {}]   ;;  %s4047_s3 = inlined_call_operand.vmem [shape: f32[4,2,1], index: 3, kind: input, shape index: {}]   ;;  %s4048_s4 = inlined_call_operand.vmem [shape: f32[4,19], index: 4, kind: input, shape index: {}]   ;;  %s4049_s5 = inlined_call_operand.vmem [shape: f32[4,37], index: 5, kind: input, shape index: {}]   ;;  %s4050_s6 = inlined_call_operand.vmem [shape: f32[4,19], index: 6, kind: input, shape index: {}]   ;;  %s4051_s7 = inlined_call_operand.vmem [shape: f32[4,37], index: 7, kind: input, shape index: {}]   ;;  %s4052_s8 = inlined_call_operand.hbm [shape: f32[2,512], index: 8, kind: output, shape index: {0}]   ;;  %s4053_s9 = inlined_call_operand.hbm [shape: f32[2,512], index: 9, kind: output, shape index: {1}]   ;;  %s4054_s10 = inlined_call_operand.hbm [shape: f32[2,1,128], index: 10, kind: output, shape index: {2}]  }
   0x1   :  { %17 = vsyncpa [#allocation4], 0 }
   0x2   :  { %18 = vsyncpa [#allocation7], 0  ;;  %s2481_s13 = smov [#allocation2]   ;;  %s2387_s17 = scalar_lea.hbm %s4044_s0, 1024 }
   0x3   :  { %s24_s14 = sshll.u32 %s2481_s13, 4  ;;  %p2388_p0 = scmp.ne.s32.totalorder %s4044_s0, %s2387_s17  ;;  %s25_s14 = int_to_ptr.vmem [resolvable:$true] %s24_s14 }
   0x4   :  { %p2391_p1 = scmp.lt.u32.totalorder %s2387_s17, %s4044_s0 }
   0x6   :  { %p2393_p2 = pnand %p2391_p1, %p2388_p0 }
   0x8   :  { %2396 = shalt.err (!%p2393_p2)
}
   0x9   :  { %s2397_s22 = scalar_lea.vmem %s25_s14, 1024  ;;  %p2402_p4 = scmp.lt.s32.totalorder %s25_s14, %s25_s14 }
   0xa   :  { %p2398_p3 = scmp.ne.s32.totalorder %s25_s14, %s2397_s22  ;;  %p2403_p5 = scmp.lt.s32.totalorder %s2397_s22, %s2397_s22 }
   0xc   :  { %p2404_p6 = por %p2403_p5, %p2402_p4 }
   0xe   :  { %p2405_p7 = pnand %p2404_p6, %p2398_p3 }
  0x10   :  { %2408 = shalt.err (!%p2405_p7)
}
  0x11   :  { %s2482_s23 = smov 512   ;;  %s2483_s24 = smov 32  }
  0x12   :  { %30 = dma.hbm_to_vmem [thread:$0]  %s4044_s0, 1024, %s25_s14, [#allocation3], %s2482_s23, %s2482_s23, %s2483_s24  }
  0x13   :  { %2475 = dma.done.wait [#allocation3], 1024  }
  0x14   :  { %2476 = vsyncadd [#allocation3], 4294966272  ;;  %v2484_v0 = vmov 0   ;;  %v56_v1 = vld [vmem:[%s4047_s3] sm:$0x3]  ;;  %v68_v5 = vlaneseq  ;;  %s2487_s12 = smov 127  }
  0x15   :  { %2349 = vset.pattern.permute.xlu0 %v2484_v0  ;;  %2350 = vset.pattern.permute.xlu1 %v2484_v0  ;;  %v57_v2 = vld [vmem:[%s4047_s3 + $0x2] sm:$0x3]  ;;  %v2485_v3 = vmov 269488144   ;;  %v2486_v8 = vmov 1983009808  }
  0x16   :  { %63 = vperm.xlu0 %2349, %v56_v1   ;;  %v66_v4 = vunpack.c.l.s4 %v2485_v3  ;;  %v2574_v7 = vshrl.u32 %v68_v5, 7  ;;  %v82_v9 = vunpack.c.l.s4 %v2486_v8  ;;  %v60_v12 = vld [vmem:[%s4045_s1] sm:$0xff]  ;;  %s2488_s13 = smov 16   ;;  %s2489_s1 = smov 15   ;;  %v4055_v27 = vmov 0.0   ;;  %v49_v43 = vld [vmem:[#allocation2 + $0x8] sm:$0xff] }
  0x17   :  { %s2490_s14 = smov 113   ;;  %s2491_s15 = smov 17   ;;  %601 = vmatprep.mubr.f32.mxu0 %v4055_v27  ;;  %672 = vmatprep.mubr.f32.mxu1 %v4055_v27  ;;  %v2687_v40 = vand.u32 127, %v68_v5  ;;  %v2691_v44 = vld [vmem:[#allocation2] sm:$0xff]  ;;  %v2704_v51 = vld [vmem:[#allocation2 + $0x10] sm:$0xff]  ;;  %v2727_v59 = vld [vmem:[#allocation2 + $0x18] sm:$0xff] }
  0x18   :  { %v67_v6 = vunpack.c.0.s8 %v66_v4  ;;  %v83_v11 = vunpack.c.0.s8 %v82_v9  ;;  %s2492_s16 = smov 1   ;;  %s2493_s17 = smov 112   ;;  %v200_v41 = vsub.s32 1, %v2574_v7  ;;  %v299_v42 = vsub.s32 5, %v2574_v7 }
  0x19   :  { %s2494_s18 = smov 111   ;;  %v233_v45 = vsub.s32 2, %v2574_v7  ;;  %v332_v46 = vsub.s32 6, %v2574_v7  ;;  %v167_v49 = vsub.s32 0, %v2574_v7  ;;  %v2701_v50 = vsub.s32 3, %v2574_v7  ;;  %s2498_s29 = smov [#allocation5]  }
  0x1a   :  { %76 = vperm.xlu0 %2349, %v57_v2   ;;  %v2577_v10 = vsub.s32 %v67_v6, %v2574_v7  ;;  %v2583_v14 = vsub.s32 %v83_v11, %v2574_v7  ;;  %vm193_vm0 = vcmp.lt.s32.totalorder %v2687_v40, 16  ;;  %v2707_v52 = vsub.s32 7, %v2574_v7  ;;  %s2188_s30 = sshll.u32 %s2498_s29, 4  ;;  %s2189_s30 = int_to_ptr.vmem [resolvable:$true] %s2188_s30 }
  0x1b   :  { %v2709_v53 = vrot.slane %v49_v43, %v200_v41  ;;  %vm292_vm1 = vcmp.lt.s32.totalorder %v2687_v40, 127  ;;  %v2713_v54 = vrot.slane %v2691_v44, %v299_v42  ;;  %vm4098_vm2 = vcmp.lt.s32.totalorder %v2687_v40, 15 }
  0x1c   :  { %4110 = vst [vmem:[#allocation12_spill] sm:$0xff] %v2577_v10  ;;  %4111 = vst [vmem:[#allocation13_spill] sm:$0xff] %v2583_v14  ;;  %v2716_v55 = vrot.slane %v49_v43, %v233_v45  ;;  %vm325_vm3 = vcmp.lt.s32.totalorder %v2687_v40, 113  ;;  %v2720_v56 = vrot.slane %v2691_v44, %v332_v46  ;;  %vm160_vm4 = vcmp.lt.s32.totalorder %v2687_v40, 17 }
  0x1d   :  { %4117 = vst [vmem:[#allocation19_spill] sm:$0xff] %v2709_v53  ;;  %4118 = vst [vmem:[#allocation20_spill] sm:$0xff] %v2713_v54  ;;  %v2729_v60 = vrot.slane %v49_v43, %v167_v49  ;;  %v2732_v61 = vrot.slane %v2704_v51, %v200_v41  ;;  %vm259_vm5 = vcmp.lt.s32.totalorder %v2687_v40, 1  ;;  %v2736_v62 = vrot.slane %v49_v43, %v2701_v50 }
  0x1e   :  { %4119 = vst [vmem:[#allocation21_spill] sm:$0xff] %v2716_v55  ;;  %4120 = vst [vmem:[#allocation22_spill] sm:$0xff] %v2720_v56  ;;  %v2738_v63 = vrot.slane %v49_v43, %v299_v42  ;;  %vm4099_vm6 = vcmp.lt.s32.totalorder %v2687_v40, 112  ;;  %v2743_v0 = vrot.slane %v2691_v44, %v2707_v52  ;;  %v2746_v1 = vrot.slane %v2704_v51, %v233_v45 }
  0x1f   :  { %4121 = vst [vmem:[#allocation23_spill] sm:$0xff] %v2729_v60  ;;  %v2749_v2 = vrot.slane %v2691_v44, %v200_v41  ;;  %v2752_v3 = vrot.slane %v2727_v59, %v200_v41  ;;  %v2754_v4 = vrot.slane %v49_v43, %v332_v46  ;;  %v2757_v5 = vrot.slane %v2704_v51, %v299_v42 }
  0x20   :  { %4122 = vst [vmem:[#allocation24_spill] sm:$0xff] %v2738_v63  ;;  %4123 = vst [vmem:[#allocation25_spill] sm:$0xff] %v2743_v0  ;;  %v2770_v11 = vrot.slane %v2727_v59, %v299_v42  ;;  %vm4097_vm7 = vcmask 1041408   ;;  %vm4096_vm8 = vcmask 1043456   ;;  %vm4095_vm9 = vcmask 1045504  }
  0x21   :  { %vm4094_vm10 = vcmp.lt.s32.totalorder %v2687_v40, 111  ;;  %vm4093_vm11 = vcmask 1042432   ;;  %vm4092_vm12 = vcmask 154624   ;;  %vm4091_vm13 = vcmask 1044480  }
  0x22   :  { %vm4090_vm14 = vcmask 302080  }
  0x95   :  { %v64_v13 = vpop.permute.xlu0 %63 }
  0x96   :  { %v71_v15 = vrot.slane %v64_v13, %v2577_v10 }
  0x98   :  { %v73_v16 = vadd.f32 %v71_v15, %v60_v12  ;;  %v2773_v12 = vrot.slane %v2704_v51, %v167_v49  ;;  %v2780_v15 = vrot.slane %v2691_v44, %v233_v45 }
  0x99   :  { %v77_v18 = vpop.permute.xlu0 %76 }
  0x9a   :  { %v87_v17 = vrot.slane %v73_v16, %v2583_v14  ;;  %v80_v22 = vcombine.high %v73_v16, %v73_v16  ;;  %4124 = vst [vmem:[#allocation26_spill] sm:$0xff] %v2773_v12  ;;  %v2783_v16 = vrot.slane %v2727_v59, %v233_v45 }
  0x9c   :  { %v95_v19 = vcombine.high %v87_v17, %v87_v17  ;;  %v2587_v20 = vmul.f32 %v87_v17, %v77_v18  ;;  %v94_v23 = vrot.slane %v80_v22, %v2583_v14  ;;  %v2787_v17 = vrot.slane %v2704_v51, %v2701_v50 }
  0x9e   :  { %4112 = vst [vmem:[#allocation14_spill] sm:$0xff] %v2587_v20  ;;  %284 = vrot.lane.b32.xlu0 %v2587_v20, %s2487_s12  ;;  %185 = vrot.lane.b32.xlu1 %v2587_v20, %s2488_s13  ;;  %v2593_v21 = vmul.f32 %v95_v19, %v77_v18  ;;  %v2616_v24 = vmul.f32 %v94_v23, %v77_v18  ;;  %4125 = vst [vmem:[#allocation27_spill] sm:$0xff] %v2787_v17 }
  0x9f   :  { %v96_v25 = vcombine.high %v94_v23, %v94_v23  ;;  %v2802_v23 = vrot.slane %v2704_v51, %v332_v46 }
  0xa0   :  { %4113 = vst [vmem:[#allocation15_spill] sm:$0xff] %v2593_v21  ;;  %4114 = vst [vmem:[#allocation16_spill] sm:$0xff] %v2616_v24 }
  0xa1   :  { %v2626_v26 = vmul.f32 %v96_v25, %v77_v18 }
  0xa2   :  { %218 = vrot.lane.b32.xlu0 %v2587_v20, %s2489_s1  ;;  %187 = vrot.lane.b32.xlu1 %v2593_v21, %s2488_s13 }
  0xa3   :  { %4115 = vst [vmem:[#allocation17_spill] sm:$0xff] %v2626_v26 }
  0xa6   :  { %317 = vrot.lane.b32.xlu0 %v2587_v20, %s2490_s14  ;;  %286 = vrot.lane.b32.xlu1 %v2593_v21, %s2487_s12 }
  0xaa   :  { %150 = vrot.lane.b32.xlu0 %v2587_v20, %s2491_s15  ;;  %220 = vrot.lane.b32.xlu1 %v2593_v21, %s2489_s1 }
  0xae   :  { %251 = vrot.lane.b32.xlu0 %v2587_v20, %s2492_s16  ;;  %319 = vrot.lane.b32.xlu1 %v2593_v21, %s2490_s14 }
  0xb2   :  { %350 = vrot.lane.b32.xlu0 %v2587_v20, %s2493_s17  ;;  %152 = vrot.lane.b32.xlu1 %v2593_v21, %s2491_s15 }
  0xb6   :  { %189 = vrot.lane.b32.xlu0 %v2616_v24, %s2488_s13  ;;  %253 = vrot.lane.b32.xlu1 %v2593_v21, %s2492_s16 }
  0xba   :  { %288 = vrot.lane.b32.xlu0 %v2616_v24, %s2487_s12  ;;  %352 = vrot.lane.b32.xlu1 %v2593_v21, %s2493_s17 }
  0xbe   :  { %222 = vrot.lane.b32.xlu0 %v2616_v24, %s2489_s1  ;;  %191 = vrot.lane.b32.xlu1 %v2626_v26, %s2488_s13 }
  0xc2   :  { %321 = vrot.lane.b32.xlu0 %v2616_v24, %s2490_s14  ;;  %290 = vrot.lane.b32.xlu1 %v2626_v26, %s2487_s12 }
  0xc6   :  { %154 = vrot.lane.b32.xlu0 %v2616_v24, %s2491_s15  ;;  %224 = vrot.lane.b32.xlu1 %v2626_v26, %s2489_s1 }
  0xca   :  { %255 = vrot.lane.b32.xlu0 %v2616_v24, %s2492_s16  ;;  %323 = vrot.lane.b32.xlu1 %v2626_v26, %s2490_s14 }
  0xce   :  { %354 = vrot.lane.b32.xlu0 %v2616_v24, %s2493_s17  ;;  %156 = vrot.lane.b32.xlu1 %v2626_v26, %s2491_s15 }
  0xd2   :  { %383 = vrot.lane.b32.xlu0 %v2587_v20, %s2494_s18  ;;  %257 = vrot.lane.b32.xlu1 %v2626_v26, %s2492_s16 }
  0xd6   :  { %387 = vrot.lane.b32.xlu0 %v2616_v24, %s2494_s18  ;;  %356 = vrot.lane.b32.xlu1 %v2626_v26, %s2493_s17  ;;  %v2816_v24 = vrot.slane %v2727_v59, %v332_v46 }
  0xda   :  { %385 = vrot.lane.b32.xlu1 %v2593_v21, %s2494_s18 }
  0xde   :  { %389 = vrot.lane.b32.xlu1 %v2626_v26, %s2494_s18 }
 0x110   :  { %v2662_v28 = vpop.permute.xlu0 %284  ;;  %v2664_v29 = vpop.permute.xlu1 %185 }
 0x114   :  { %v2666_v30 = vpop.permute.xlu0 %218  ;;  %v2668_v31 = vpop.permute.xlu1 %187 }
 0x115   :  { %v196_v6 = vsel %vm193_vm0, %v2664_v29, %v2668_v31 }
 0x116   :  { %v215_v25 = vmul.f32 %v2709_v53, %v196_v6  ;;  %v2819_v6 = vrot.slane %v49_v43, %v2707_v52 }
 0x118   :  { %v2670_v32 = vpop.permute.xlu0 %317  ;;  %v2672_v33 = vpop.permute.xlu1 %286 }
 0x119   :  { %v295_v7 = vsel %vm292_vm1, %v2662_v28, %v2672_v33 }
 0x11a   :  { %v313_v41 = vmul.f32 %v2713_v54, %v295_v7  ;;  %v2822_v7 = vrot.slane %v2691_v44, %v167_v49 }
 0x11c   :  { %v2674_v34 = vpop.permute.xlu0 %150  ;;  %v2676_v35 = vpop.permute.xlu1 %220 }
 0x11d   :  { %v229_v13 = vsel %vm4098_vm2, %v2666_v30, %v2676_v35 }
 0x11e   :  { %v248_v27 = vmul.f32 %v2716_v55, %v229_v13  ;;  %v2838_v55 = vrot.slane %v2691_v44, %v2701_v50 }
 0x120   :  { %v2678_v36 = vpop.permute.xlu0 %251  ;;  %v2680_v37 = vpop.permute.xlu1 %319  ;;  %4127 = vst [vmem:[#allocation29_spill] sm:$0xff] %v2838_v55 }
 0x121   :  { %v328_v18 = vsel %vm325_vm3, %v2670_v32, %v2680_v37 }
 0x124   :  { %v2682_v38 = vpop.permute.xlu0 %350  ;;  %v2684_v39 = vpop.permute.xlu1 %152 }
 0x125   :  { %4116 = vst [vmem:[#allocation18_spill] sm:$0xff] %v2682_v38  ;;  %v163_v19 = vsel %vm160_vm4, %v2674_v34, %v2684_v39 }
 0x126   :  { %v182_v54 = vmul.f32 %v2729_v60, %v163_v19  ;;  %v456_v19 = vrot.slane %v313_v41, 6 }
 0x128   :  { %v2695_v47 = vpop.permute.xlu0 %189  ;;  %v2697_v48 = vpop.permute.xlu1 %253 }
 0x129   :  { %v262_v22 = vsel %vm259_vm5, %v2678_v36, %v2697_v48  ;;  %v195_v46 = vsel %vm193_vm0, %v2668_v31, %v2695_v47  ;;  %v433_v31 = vrot.slane %v248_v27, 4 }
 0x12a   :  { %v281_v53 = vmul.f32 %v2736_v62, %v262_v22  ;;  %v2846_v22 = vrot.slane %v2727_v59, %v2701_v50 }
 0x12c   :  { %v2723_v57 = vpop.permute.xlu0 %288  ;;  %v2725_v58 = vpop.permute.xlu1 %352  ;;  %4128 = vst [vmem:[#allocation30_spill] sm:$0xff] %v2846_v22  ;;  %v445_v50 = vrot.slane %v281_v53, 2 }
 0x12d   :  { %v294_v42 = vsel %vm292_vm1, %v2672_v33, %v2723_v57  ;;  %v361_v45 = vsel %vm4099_vm6, %v2682_v38, %v2725_v58  ;;  %v346_v33 = vmul.f32 %v2720_v56, %v328_v18  ;;  %v2828_v38 = vrot.slane %v2727_v59, %v167_v49 }
 0x12e   :  { %v314_v43 = vmul.f32 %v2738_v63, %v294_v42  ;;  %v379_v13 = vmul.f32 %v2743_v0, %v361_v45  ;;  %v421_v18 = vrot.slane %v215_v25, 6  ;;  %v2858_v56 = vmul.f32 %v2732_v61, %v195_v46 }
 0x12f   :  { %4126 = vst [vmem:[#allocation28_spill] sm:$0xff] %v2828_v38 }
 0x130   :  { %v2767_v8 = vpop.permute.xlu0 %222  ;;  %v192_v9 = vpop.permute.xlu1 %191  ;;  %v490_v27 = vsel %vm4097_vm7, %v182_v54, %v421_v18  ;;  %v457_v63 = vrot.slane %v314_v43, 6  ;;  %v480_v0 = vrot.slane %v379_v13, 2  ;;  %v2875_v43 = vrot.slane %v2704_v51, %v2707_v52 }
 0x131   :  { %v228_v49 = vsel %vm4098_vm2, %v2676_v35, %v2767_v8  ;;  %v197_v42 = vsel %vm193_vm0, %v192_v9, %v2664_v29  ;;  %v468_v35 = vrot.slane %v346_v33, 4  ;;  %v2879_v13 = vrot.slane %v2727_v59, %v2707_v52 }
 0x132   :  { %v2862_v29 = vmul.f32 %v2746_v1, %v228_v49  ;;  %4129 = vst [vmem:[#allocation31_spill] sm:$0xff] %v2875_v43  ;;  %v422_v18 = vrot.slane %v2858_v56, 6  ;;  %v504_v52 = vsel %vm4097_vm7, %v2593_v21, %v457_v63 }
 0x133   :  { %4130 = vst [vmem:[#allocation32_spill] sm:$0xff] %v2879_v13 }
 0x134   :  { %v322_v14 = vpop.permute.xlu0 %321  ;;  %v291_v10 = vpop.permute.xlu1 %290  ;;  %v434_v51 = vrot.slane %v2862_v29, 4 }
 0x135   :  { %v327_v44 = vsel %vm325_vm3, %v2680_v37, %v322_v14  ;;  %v296_v25 = vsel %vm292_vm1, %v291_v10, %v2662_v28  ;;  %v194_v37 = vsel %vm193_vm0, %v2695_v47, %v192_v9  ;;  %v214_v28 = vmul.f32 %v2749_v2, %v197_v42 }
 0x136   :  { %v347_v60 = vmul.f32 %v2754_v4, %v327_v44  ;;  %v293_v33 = vsel %vm292_vm1, %v2723_v57, %v291_v10  ;;  %v316_v53 = vmul.f32 %v2770_v11, %v296_v25  ;;  %v495_v47 = vsel %vm4096_vm8, %v490_v27, %v433_v31 }
 0x137   :  { %v503_v9 = vsel %vm4097_vm7, %v2587_v20, %v456_v19  ;;  %v217_v10 = vmul.f32 %v2752_v3, %v194_v37  ;;  %v500_v57 = vsel %vm4095_vm9, %v495_v47, %v445_v50  ;;  %v2890_v42 = vmul.f32 %v2757_v5, %v293_v33 }
 0x138   :  { %v155_v41 = vpop.permute.xlu0 %154  ;;  %v225_v45 = vpop.permute.xlu1 %224  ;;  %v507_v49 = vsel %vm4096_vm8, %v503_v9, %v468_v35  ;;  %v420_v19 = vrot.slane %v214_v28, 6  ;;  %v469_v31 = vrot.slane %v347_v60, 4  ;;  %v459_v56 = vrot.slane %v316_v53, 6 }
 0x139   :  { %v2895_v59 = vsel %vm4095_vm9, %v507_v49, %v480_v0  ;;  %v162_v44 = vsel %vm160_vm4, %v2684_v39, %v155_v41  ;;  %v227_v25 = vsel %vm4098_vm2, %v2767_v8, %v225_v45  ;;  %v230_v35 = vsel %vm4098_vm2, %v225_v45, %v2666_v30 }
 0x13a   :  { %v423_v45 = vrot.slane %v217_v10, 6  ;;  %v458_v27 = vrot.slane %v2890_v42, 6  ;;  %v250_v28 = vmul.f32 %v2783_v16, %v227_v25  ;;  %v508_v49 = vsel %vm4096_vm8, %v504_v52, %v469_v31 }
 0x13b   :  { %v506_v42 = vsel %vm4097_vm7, %v2626_v26, %v459_v56 }
 0x13c   :  { %v256_v54 = vpop.permute.xlu0 %255  ;;  %v324_v46 = vpop.permute.xlu1 %323 }
 0x13d   :  { %v261_v63 = vsel %vm259_vm5, %v2697_v48, %v256_v54  ;;  %v329_v60 = vsel %vm325_vm3, %v324_v46, %v2670_v32  ;;  %v326_v39 = vsel %vm325_vm3, %v322_v14, %v324_v46  ;;  %v183_v14 = vmul.f32 %v2773_v12, %v162_v44 }
 0x13e   :  { %v282_v33 = vmul.f32 %v2787_v17, %v261_v63 }
 0x140   :  { %v355_v0 = vpop.permute.xlu0 %354  ;;  %v157_v50 = vpop.permute.xlu1 %156 }
 0x141   :  { %v360_v8 = vsel %vm4099_vm6, %v2725_v58, %v355_v0  ;;  %v161_v30 = vsel %vm160_vm4, %v155_v41, %v157_v50  ;;  %v164_v48 = vsel %vm160_vm4, %v157_v50, %v2674_v34  ;;  %v247_v58 = vmul.f32 %v2780_v15, %v230_v35 }
 0x142   :  { %v380_v32 = vmul.f32 %v2819_v6, %v360_v8  ;;  %v181_v37 = vmul.f32 %v2822_v7, %v164_v48  ;;  %v349_v41 = vmul.f32 %v2816_v24, %v329_v60  ;;  %v348_v34 = vmul.f32 %v2802_v23, %v326_v39 }
 0x143   :  { %v184_v46 = vmul.f32 %v2828_v38, %v161_v30  ;;  %v446_v8 = vrot.slane %v282_v33, 2 }
 0x144   :  { %v481_v53 = vrot.slane %v380_v32, 2  ;;  %v258_v47 = vpop.permute.xlu1 %257  ;;  %v384_v44 = vpop.permute.xlu0 %383  ;;  %v489_v60 = vsel %vm4097_vm7, %v181_v37, %v420_v19  ;;  %v471_v50 = vrot.slane %v349_v41, 4  ;;  %v470_v52 = vrot.slane %v348_v34, 4  ;;  %v2956_v41 = vld [vmem:[#allocation2 + $0x20] ss:$0 sm:$0xff] }
 0x145   :  { %v260_v9 = vsel %vm259_vm5, %v256_v54, %v258_v47  ;;  %v263_v10 = vsel %vm259_vm5, %v258_v47, %v2678_v36  ;;  %v432_v54 = vrot.slane %v247_v58, 4  ;;  %v491_v36 = vsel %vm4097_vm7, %v183_v14, %v422_v18  ;;  %v4131_v47 = vld [vmem:[#allocation18_spill] sm:$0xff] }
 0x146   :  { %v280_v25 = vmul.f32 %v2838_v55, %v263_v10  ;;  %v283_v35 = vmul.f32 %v2846_v22, %v260_v9  ;;  %v512_v63 = vsel %vm4095_vm9, %v508_v49, %v481_v53  ;;  %v492_v56 = vsel %vm4097_vm7, %v184_v46, %v423_v45  ;;  %v2958_v45 = vld [vmem:[#allocation2 + $0x28] ss:$0 sm:$0xff]  ;;  %v4132_v53 = vld [vmem:[#allocation16_spill] sm:$0xff] }
 0x147   :  { %v2278_v39 = vpack.c.bf16 %v512_v63, %v500_v57  ;;  %v494_v37 = vsel %vm4096_vm8, %v489_v60, %v432_v54  ;;  %v435_v57 = vrot.slane %v250_v28, 4  ;;  %v510_v33 = vsel %vm4096_vm8, %v506_v42, %v471_v50  ;;  %v2979_v50 = vld [vmem:[#allocation2 + $0x30] ss:$0 sm:$0xff] }
 0x148   :  { %v444_v31 = vrot.slane %v280_v25, 2  ;;  %v357_v30 = vpop.permute.xlu1 %356  ;;  %v447_v48 = vrot.slane %v283_v35, 2  ;;  %v496_v34 = vsel %vm4096_vm8, %v491_v36, %v434_v51  ;;  %v505_v28 = vsel %vm4097_vm7, %v4132_v53, %v458_v27  ;;  %v388_v46 = vpop.permute.xlu0 %387 }
 0x149   :  { %v359_v32 = vsel %vm4099_vm6, %v355_v0, %v357_v30  ;;  %v362_v19 = vsel %vm4099_vm6, %v357_v30, %v4131_v47  ;;  %2279 = vmatprep.subr.bf16.mxu0 %v2278_v39  ;;  %v497_v25 = vsel %vm4096_vm8, %v492_v56, %v435_v57  ;;  %v501_v35 = vsel %vm4095_vm9, %v496_v34, %v446_v8  ;;  %v2981_v39 = vld [vmem:[#allocation2 + $0x38] ss:$0 sm:$0xff] }
 0x14a   :  { %v381_v18 = vmul.f32 %v2875_v43, %v359_v32  ;;  %v382_v14 = vmul.f32 %v2879_v13, %v362_v19  ;;  %v499_v58 = vsel %vm4095_vm9, %v494_v37, %v444_v31  ;;  %v502_v29 = vsel %vm4095_vm9, %v497_v25, %v447_v48 }
 0x14b   :  { %v2280_v0 = vpack.c.bf16 %v2895_v59, %v499_v58  ;;  %v509_v51 = vsel %vm4096_vm8, %v505_v28, %v470_v52  ;;  %v519_v52 = vld [vmem:[%s4048_s4] sm:$0xf] }
 0x14c   :  { %v482_v9 = vrot.slane %v381_v18, 2  ;;  %v483_v10 = vrot.slane %v382_v14, 2  ;;  %v386_v49 = vpop.permute.xlu1 %385  ;;  %v4133_v18 = vmov 0.0  }
 0x14d   :  { %v393_v59 = vsel %vm4094_vm10, %v386_v49, %v388_v46  ;;  %v394_v42 = vsel %vm4094_vm10, %v384_v44, %v386_v49  ;;  %2281 = vmatpush1.bf16.msra.mxu0 %v2280_v0 }
 0x14e   :  { %v412_v27 = vmul.f32 %v2956_v41, %v394_v42  ;;  %v413_v63 = vmul.f32 %v2958_v45, %v393_v59  ;;  %v514_v60 = vsel %vm4095_vm9, %v510_v33, %v483_v10  ;;  %v513_v54 = vsel %vm4095_vm9, %v509_v51, %v482_v9  ;;  %v58_v9 = vld [vmem:[%s4047_s3 + $0x4] sm:$0x3]  ;;  %v59_v10 = vld [vmem:[%s4047_s3 + $0x6] sm:$0x3] }
 0x14f   :  { %v2282_v36 = vpack.c.bf16 %v514_v60, %v502_v29  ;;  %v2284_v8 = vpack.c.bf16 %v513_v54, %v501_v35  ;;  %v4134_v60 = vld [vmem:[#allocation19_spill] sm:$0xff] }
 0x150   :  { %v390_v31 = vpop.permute.xlu1 %389  ;;  %v516_v30 = vsel %vm4097_vm7, %v413_v63, 1.0  ;;  %v515_v56 = vsel %vm4097_vm7, %v412_v27, 1.0 }
 0x151   :  { %v392_v48 = vsel %vm4094_vm10, %v388_v46, %v390_v31  ;;  %v395_v32 = vsel %vm4094_vm10, %v390_v31, %v384_v44  ;;  %2230 = vmatprep.subr.msk.mxu0 %vm4093_vm11, %v516_v30  ;;  %2283 = vmatprep.subr.bf16.mxu1 %v2282_v36  ;;  %v4135_v31 = vld [vmem:[#allocation23_spill] sm:$0xff] }
 0x152   :  { %v414_v47 = vmul.f32 %v2979_v50, %v392_v48  ;;  %v415_v19 = vmul.f32 %v2981_v39, %v395_v32  ;;  %2231 = vmatpush1.msk.msra.mxu0 %vm4093_vm11, %v515_v56  ;;  %2285 = vmatpush1.bf16.msra.mxu1 %v2284_v8 }
 0x153   :  { %2232 = vmatmul.mubr.msk.f32.vlgmr.msra.gmra.mrb[0].mxu0 %vm4092_vm12, %v519_v52 }
 0x154   :  { %v518_v37 = vsel %vm4097_vm7, %v415_v19, 1.0  ;;  %v517_v57 = vsel %vm4097_vm7, %v414_v47, 1.0  ;;  %961 = vmatprep.mubr.f32.mxu0 %v4133_v18  ;;  %v4136_v47 = vld [vmem:[#allocation21_spill] sm:$0xff] }
 0x155   :  { %2233 = vmatprep.subr.msk.mxu1 %vm4093_vm11, %v518_v37 }
 0x156   :  { %2234 = vmatpush1.msk.msra.mxu1 %vm4093_vm11, %v517_v57 }
 0x157   :  { %2235 = vmatmul.mubr.msk.f32.vlgmr.msra.gmra.mrb[0].mxu1 %vm4092_vm12, %v519_v52 }
 0x158   :  { %1032 = vmatprep.mubr.f32.mxu1 %v4133_v18 }
 0x226   :  { %v603_v44 = vpop.f32.mrb[0].mxu0 }
 0x227   :  { %v3004_v14 = vmax.f32 %v603_v44, 0.0  ;;  %v605_v58 = vpop.f32.mrb[1].mxu0 }
 0x228   :  { %v3006_v0 = vmax.f32 %v605_v58, 0.0 }
 0x229   :  { %699 = vrot.lane.b32.xlu0 %v3004_v14, %s2488_s13 }
 0x22a   :  { %701 = vrot.lane.b32.xlu1 %v3006_v0, %s2488_s13  ;;  %v674_v33 = vpop.f32.mrb[0].mxu1 }
 0x22b   :  { %v676_v34 = vpop.f32.mrb[1].mxu1  ;;  %v3032_v28 = vmax.f32 %v674_v33, 0.0 }
 0x22c   :  { %v3036_v46 = vmax.f32 %v676_v34, 0.0 }
 0x22d   :  { %731 = vrot.lane.b32.xlu0 %v3004_v14, %s2492_s16 }
 0x22e   :  { %733 = vrot.lane.b32.xlu1 %v3006_v0, %s2492_s16 }
 0x231   :  { %683 = vrot.lane.b32.xlu0 %v3004_v14, %s2491_s15 }
 0x232   :  { %685 = vrot.lane.b32.xlu1 %v3006_v0, %s2491_s15 }
 0x235   :  { %715 = vrot.lane.b32.xlu0 %v3004_v14, %s2489_s1 }
 0x236   :  { %717 = vrot.lane.b32.xlu1 %v3006_v0, %s2489_s1 }
 0x239   :  { %747 = vrot.lane.b32.xlu0 %v3004_v14, %s2487_s12 }
 0x23a   :  { %749 = vrot.lane.b32.xlu1 %v3006_v0, %s2487_s12 }
 0x23d   :  { %779 = vrot.lane.b32.xlu0 %v3004_v14, %s2493_s17 }
 0x23e   :  { %781 = vrot.lane.b32.xlu1 %v3006_v0, %s2493_s17 }
 0x241   :  { %763 = vrot.lane.b32.xlu0 %v3004_v14, %s2490_s14 }
 0x242   :  { %765 = vrot.lane.b32.xlu1 %v3006_v0, %s2490_s14 }
 0x245   :  { %703 = vrot.lane.b32.xlu0 %v3032_v28, %s2488_s13 }
 0x246   :  { %705 = vrot.lane.b32.xlu1 %v3036_v46, %s2488_s13 }
 0x249   :  { %735 = vrot.lane.b32.xlu0 %v3032_v28, %s2492_s16 }
 0x24a   :  { %737 = vrot.lane.b32.xlu1 %v3036_v46, %s2492_s16 }
 0x24d   :  { %687 = vrot.lane.b32.xlu0 %v3032_v28, %s2491_s15 }
 0x24e   :  { %689 = vrot.lane.b32.xlu1 %v3036_v46, %s2491_s15 }
 0x251   :  { %719 = vrot.lane.b32.xlu0 %v3032_v28, %s2489_s1 }
 0x252   :  { %721 = vrot.lane.b32.xlu1 %v3036_v46, %s2489_s1 }
 0x255   :  { %751 = vrot.lane.b32.xlu0 %v3032_v28, %s2487_s12 }
 0x256   :  { %753 = vrot.lane.b32.xlu1 %v3036_v46, %s2487_s12 }
 0x259   :  { %783 = vrot.lane.b32.xlu0 %v3032_v28, %s2493_s17 }
 0x25a   :  { %785 = vrot.lane.b32.xlu1 %v3036_v46, %s2493_s17 }
 0x25d   :  { %767 = vrot.lane.b32.xlu0 %v3032_v28, %s2490_s14 }
 0x25e   :  { %769 = vrot.lane.b32.xlu1 %v3036_v46, %s2490_s14 }
 0x261   :  { %795 = vrot.lane.b32.xlu0 %v3004_v14, %s2494_s18 }
 0x262   :  { %797 = vrot.lane.b32.xlu1 %v3006_v0, %s2494_s18 }
 0x265   :  { %799 = vrot.lane.b32.xlu0 %v3032_v28, %s2494_s18 }
 0x266   :  { %801 = vrot.lane.b32.xlu1 %v3036_v46, %s2494_s18 }
 0x269   :  { %108 = vperm.xlu0 %2349, %v58_v9  }
 0x26a   :  { %121 = vperm.xlu1 %2350, %v59_v10  }
 0x29b   :  { %v700_v49 = vpop.permute.xlu0 %699 }
 0x29c   :  { %v702_v25 = vpop.permute.xlu1 %701 }
 0x29d   :  { %v709_v42 = vsel %vm193_vm0, %v700_v49, %v702_v25 }
 0x29e   :  { %v712_v54 = vmul.f32 %v709_v42, %v4134_v60 }
 0x29f   :  { %v732_v35 = vpop.permute.xlu0 %731 }
 0x2a0   :  { %v734_v59 = vpop.permute.xlu1 %733  ;;  %v816_v48 = vrot.slane %v712_v54, 4 }
 0x2a1   :  { %v741_v29 = vsel %vm259_vm5, %v732_v35, %v734_v59 }
 0x2a2   :  { %v744_v36 = vmul.f32 %v741_v29, %v2736_v62 }
 0x2a3   :  { %v684_v51 = vpop.permute.xlu0 %683 }
 0x2a4   :  { %v686_v27 = vpop.permute.xlu1 %685  ;;  %v828_v32 = vrot.slane %v744_v36, 4 }
 0x2a5   :  { %v693_v63 = vsel %vm160_vm4, %v684_v51, %v686_v27 }
 0x2a6   :  { %v696_v30 = vmul.f32 %v693_v63, %v4135_v31 }
 0x2a7   :  { %v716_v8 = vpop.permute.xlu0 %715 }
 0x2a8   :  { %v718_v56 = vpop.permute.xlu1 %717  ;;  %v860_v44 = vsel %vm4096_vm8, %v696_v30, %v816_v48 }
 0x2a9   :  { %v725_v52 = vsel %vm4098_vm2, %v716_v8, %v718_v56 }
 0x2aa   :  { %v728_v19 = vmul.f32 %v725_v52, %v4136_v47 }
 0x2ab   :  { %v748_v37 = vpop.permute.xlu0 %747 }
 0x2ac   :  { %v750_v57 = vpop.permute.xlu1 %749  ;;  %v864_v58 = vsel %vm4096_vm8, %v728_v19, %v828_v32 }
 0x2ad   :  { %v2286_v33 = vpack.c.bf16 %v864_v58, %v860_v44 }
 0x2af   :  { %v3096_v34 = vpop.permute.xlu0 %779  ;;  %2287 = vmatprep.subr.bf16.mxu0 %v2286_v33 }
 0x2b0   :  { %v3098_v9 = vpop.permute.xlu1 %781 }
 0x2b3   :  { %v3100_v10 = vpop.permute.xlu0 %763 }
 0x2b4   :  { %v3102_v42 = vpop.permute.xlu1 %765 }
 0x2b7   :  { %v704_v29 = vpop.permute.xlu0 %703 }
 0x2b8   :  { %v706_v63 = vpop.permute.xlu1 %705  ;;  %v708_v32 = vsel %vm193_vm0, %v702_v25, %v704_v29  ;;  %v757_v25 = vsel %vm292_vm1, %v748_v37, %v750_v57 }
 0x2b9   :  { %v710_v52 = vsel %vm193_vm0, %v706_v63, %v700_v49  ;;  %v707_v58 = vsel %vm193_vm0, %v704_v29, %v706_v63 }
 0x2ba   :  { %v711_v33 = vmul.f32 %v710_v52, %v2749_v2  ;;  %v714_v52 = vmul.f32 %v707_v58, %v2752_v3 }
 0x2bb   :  { %v736_v54 = vpop.permute.xlu0 %735 }
 0x2bc   :  { %v738_v36 = vpop.permute.xlu1 %737  ;;  %v740_v30 = vsel %vm259_vm5, %v734_v59, %v736_v54  ;;  %v815_v53 = vrot.slane %v711_v33, 4 }
 0x2bd   :  { %v742_v48 = vsel %vm259_vm5, %v738_v36, %v732_v35  ;;  %v739_v19 = vsel %vm259_vm5, %v736_v54, %v738_v36  ;;  %v745_v49 = vmul.f32 %v740_v30, %v2787_v17  ;;  %v789_v54 = vsel %vm4099_vm6, %v3096_v34, %v3098_v9 }
 0x2be   :  { %v743_v26 = vmul.f32 %v742_v48, %v2838_v55  ;;  %v746_v29 = vmul.f32 %v739_v19, %v2846_v22  ;;  %v713_v36 = vmul.f32 %v708_v32, %v2732_v61 }
 0x2bf   :  { %v688_v44 = vpop.permute.xlu0 %687  ;;  %v829_v21 = vrot.slane %v745_v49, 4 }
 0x2c0   :  { %v690_v59 = vpop.permute.xlu1 %689  ;;  %v827_v20 = vrot.slane %v743_v26, 4  ;;  %v817_v49 = vrot.slane %v713_v36, 4 }
 0x2c1   :  { %v694_v35 = vsel %vm160_vm4, %v690_v59, %v684_v51  ;;  %v691_v63 = vsel %vm160_vm4, %v688_v44, %v690_v59  ;;  %v692_v51 = vsel %vm160_vm4, %v686_v27, %v688_v44  ;;  %v830_v44 = vrot.slane %v746_v29, 4 }
 0x2c2   :  { %v695_v30 = vmul.f32 %v694_v35, %v2822_v7  ;;  %v698_v22 = vmul.f32 %v691_v63, %v2828_v38  ;;  %v697_v58 = vmul.f32 %v692_v51, %v2773_v12  ;;  %v4140_v38 = vld [vmem:[#allocation22_spill] sm:$0xff] }
 0x2c3   :  { %v720_v48 = vpop.permute.xlu0 %719 }
 0x2c4   :  { %v724_v55 = vsel %vm4098_vm2, %v718_v56, %v720_v48  ;;  %v722_v19 = vpop.permute.xlu1 %721  ;;  %v773_v56 = vsel %vm325_vm3, %v3100_v10, %v3102_v42  ;;  %v859_v35 = vsel %vm4096_vm8, %v695_v30, %v815_v53  ;;  %v4137_v30 = vld [vmem:[#allocation25_spill] sm:$0xff] }
 0x2c5   :  { %v729_v59 = vmul.f32 %v724_v55, %v2746_v1  ;;  %v723_v32 = vsel %vm4098_vm2, %v720_v48, %v722_v19  ;;  %v726_v27 = vsel %vm4098_vm2, %v722_v19, %v716_v8  ;;  %v818_v55 = vrot.slane %v714_v52, 4 }
 0x2c6   :  { %v727_v33 = vmul.f32 %v726_v27, %v2780_v15  ;;  %v730_v26 = vmul.f32 %v723_v32, %v2783_v16  ;;  %v791_v27 = vmul.f32 %v789_v54, %v4137_v30  ;;  %v775_v12 = vmul.f32 %v773_v56, %v4140_v38 }
 0x2c7   :  { %v752_v63 = vpop.permute.xlu0 %751  ;;  %v865_v48 = vsel %vm4096_vm8, %v729_v59, %v829_v21  ;;  %v862_v53 = vsel %vm4096_vm8, %v698_v22, %v818_v55  ;;  %v861_v21 = vsel %vm4096_vm8, %v697_v58, %v817_v49  ;;  %v4138_v59 = vld [vmem:[#allocation20_spill] sm:$0xff] }
 0x2c8   :  { %v863_v8 = vsel %vm4096_vm8, %v727_v33, %v827_v20  ;;  %v756_v29 = vsel %vm292_vm1, %v750_v57, %v752_v63  ;;  %v754_v51 = vpop.permute.xlu1 %753  ;;  %v866_v19 = vsel %vm4096_vm8, %v730_v26, %v830_v44  ;;  %v759_v33 = vmul.f32 %v757_v25, %v4138_v59  ;;  %v4139_v57 = vld [vmem:[#allocation24_spill] sm:$0xff] }
 0x2c9   :  { %v755_v32 = vsel %vm292_vm1, %v752_v63, %v754_v51  ;;  %v758_v36 = vsel %vm292_vm1, %v754_v51, %v748_v37  ;;  %v2288_v52 = vpack.c.bf16 %v863_v8, %v859_v35  ;;  %v2294_v20 = vpack.c.bf16 %v866_v19, %v862_v53 }
 0x2ca   :  { %v760_v17 = vmul.f32 %v756_v29, %v4139_v57  ;;  %v761_v44 = vmul.f32 %v755_v32, %v2757_v5  ;;  %v2296_v63 = vpack.c.bf16 %v865_v48, %v861_v21  ;;  %v762_v37 = vmul.f32 %v758_v36, %v2770_v11 }
 0x2cb   :  { %v784_v26 = vpop.permute.xlu0 %783  ;;  %2289 = vmatpush1.bf16.msra.mxu0 %v2288_v52  ;;  %2295 = vmatprep.subr.bf16.mxu1 %v2294_v20  ;;  %v851_v55 = vrot.slane %v791_v27, 4  ;;  %v839_v48 = vrot.slane %v759_v33, 4 }
 0x2cc   :  { %v788_v22 = vsel %vm4099_vm6, %v3098_v9, %v784_v26  ;;  %v786_v54 = vpop.permute.xlu1 %785  ;;  %2297 = vmatpush1.bf16.msra.mxu1 %v2296_v63  ;;  %v840_v8 = vrot.slane %v760_v17, 4  ;;  %v841_v9 = vrot.slane %v761_v44, 4  ;;  %v842_v19 = vrot.slane %v762_v37, 4 }
 0x2cd   :  { %v792_v58 = vmul.f32 %v788_v22, %v2819_v6  ;;  %v787_v25 = vsel %vm4099_vm6, %v784_v26, %v786_v54  ;;  %v790_v49 = vsel %vm4099_vm6, %v786_v54, %v3096_v34  ;;  %v871_v51 = vsel %vm4096_vm8, %v775_v12, %v851_v55 }
 0x2ce   :  { %v793_v56 = vmul.f32 %v787_v25, %v2875_v43  ;;  %v794_v35 = vmul.f32 %v790_v49, %v2879_v13  ;;  %v869_v33 = vsel %vm4096_vm8, %v3032_v28, %v841_v9  ;;  %v868_v26 = vsel %vm4096_vm8, %v3006_v0, %v840_v8 }
 0x2cf   :  { %v768_v29 = vpop.permute.xlu0 %767  ;;  %v852_v52 = vrot.slane %v792_v58, 4  ;;  %v870_v54 = vsel %vm4096_vm8, %v3036_v46, %v842_v19 }
 0x2d0   :  { %v772_v32 = vsel %vm325_vm3, %v3102_v42, %v768_v29  ;;  %v770_v36 = vpop.permute.xlu1 %769  ;;  %v853_v27 = vrot.slane %v793_v56, 4  ;;  %v854_v21 = vrot.slane %v794_v35, 4  ;;  %v867_v42 = vsel %vm4096_vm8, %v3004_v14, %v839_v48 }
 0x2d1   :  { %v776_v34 = vmul.f32 %v772_v32, %v2754_v4  ;;  %v771_v53 = vsel %vm325_vm3, %v768_v29, %v770_v36  ;;  %v774_v17 = vsel %vm325_vm3, %v770_v36, %v3100_v10  ;;  %v2292_v25 = vpack.c.bf16 %v871_v51, %v867_v42  ;;  %v879_v51 = vld [vmem:[%s4049_s5] sm:$0xf] }
 0x2d2   :  { %v777_v12 = vmul.f32 %v771_v53, %v2802_v23  ;;  %v778_v20 = vmul.f32 %v774_v17, %v2816_v24 }
 0x2d3   :  { %v796_v44 = vpop.permute.xlu0 %795  ;;  %v872_v63 = vsel %vm4096_vm8, %v776_v34, %v852_v52 }
 0x2d4   :  { %v873_v10 = vsel %vm4096_vm8, %v777_v12, %v853_v27  ;;  %v798_v37 = vpop.permute.xlu1 %797  ;;  %v2290_v22 = vpack.c.bf16 %v872_v63, %v868_v26  ;;  %v874_v58 = vsel %vm4096_vm8, %v778_v20, %v854_v21 }
 0x2d5   :  { %v805_v14 = vsel %vm4094_vm10, %v796_v44, %v798_v37  ;;  %v2298_v28 = vpack.c.bf16 %v874_v58, %v870_v54  ;;  %v2300_v49 = vpack.c.bf16 %v873_v10, %v869_v33 }
 0x2d6   :  { %2291 = vmatprep.subr.bf16.mxu0 %v2290_v22  ;;  %v807_v0 = vmul.f32 %v2956_v41, %v805_v14 }
 0x2d7   :  { %v800_v55 = vpop.permute.xlu0 %799  ;;  %2293 = vmatpush1.bf16.msra.mxu0 %v2292_v25  ;;  %2299 = vmatprep.subr.bf16.mxu1 %v2298_v28 }
 0x2d8   :  { %v804_v56 = vsel %vm4094_vm10, %v798_v37, %v800_v55  ;;  %2301 = vmatpush1.bf16.msra.mxu1 %v2300_v49  ;;  %v802_v35 = vpop.permute.xlu1 %801 }
 0x2d9   :  { %v808_v46 = vmul.f32 %v2958_v45, %v804_v56  ;;  %v803_v48 = vsel %vm4094_vm10, %v800_v55, %v802_v35  ;;  %v806_v8 = vsel %vm4094_vm10, %v802_v35, %v796_v44  ;;  %v875_v45 = vsel %vm4096_vm8, %v807_v0, 1.0 }
 0x2da   :  { %v809_v9 = vmul.f32 %v2979_v50, %v803_v48  ;;  %v810_v29 = vmul.f32 %v2981_v39, %v806_v8 }
 0x2db   :  { %v876_v41 = vsel %vm4096_vm8, %v808_v46, 1.0 }
 0x2dc   :  { %v877_v19 = vsel %vm4096_vm8, %v809_v9, 1.0  ;;  %2236 = vmatprep.subr.msk.mxu0 %vm4091_vm13, %v876_v41  ;;  %v878_v32 = vsel %vm4096_vm8, %v810_v29, 1.0 }
 0x2dd   :  { %2237 = vmatpush1.msk.msra.mxu0 %vm4091_vm13, %v875_v45  ;;  %2239 = vmatprep.subr.msk.mxu1 %vm4091_vm13, %v878_v32 }
 0x2de   :  { %2238 = vmatmul.mubr.msk.f32.vlgmr.msra.gmra.mrb[2].mxu0 %vm4090_vm14, %v879_v51  ;;  %2240 = vmatpush1.msk.msra.mxu1 %vm4091_vm13, %v877_v19  ;;  %vm2496_vm13 = vmmov 1  }
 0x2df   :  { %2241 = vmatmul.mubr.msk.f32.vlgmr.msra.gmra.mrb[2].mxu1 %vm4090_vm14, %v879_v51  ;;  %1507 = vmatprep.mubr.f32.mxu0 %v4133_v18 }
 0x2e0   :  { %1578 = vmatprep.mubr.f32.mxu1 %v4133_v18 }
 0x2e8   :  { %v109_v44 = vpop.permute.xlu0 %108 }
 0x3b1   :  { %v3229_v50 = vpop.f32.mrb[2].mxu0 }
 0x3b2   :  { %v3232_v39 = vand.u32 2147483647, %v3229_v50  ;;  %v3234_v36 = vpop.f32.mrb[3].mxu0  ;;  %v3236_v52 = vpop.f32.mrb[2].mxu1 }
 0x3b3   :  { %v3239_v34 = vand.u32 2147483647, %v3234_v36  ;;  %v3242_v53 = vand.u32 2147483647, %v3236_v52  ;;  %v3265_v42 = vpop.f32.mrb[3].mxu1 }
 0x3b4   :  { %vm1043_vm15 = vcmp.gt.f32.partialorder %v3232_v39, 2.4142137  ;;  %vm1047_vm14 = vcmp.gt.f32.partialorder %v3232_v39, 0.41421357  ;;  %v1071_v17 = vadd.f32 1.0, %v3232_v39  ;;  %v2242_v49 = vadd.f32 -1.0, %v3232_v39 }
 0x3b5   :  { %vm1051_vm12 = vmxor %vm1043_vm15, %vm2496_vm13  ;;  %vm1044_vm11 = vcmp.gt.f32.partialorder %v3239_v34, 2.4142137  ;;  %vm1048_vm10 = vcmp.gt.f32.partialorder %v3239_v34, 0.41421357  ;;  %v1072_v27 = vadd.f32 1.0, %v3239_v34  ;;  %v1073_v20 = vadd.f32 1.0, %v3242_v53 }
 0x3b6   :  { %vm3253_vm9 = vmand %vm1047_vm14, %vm1051_vm12  ;;  %vm1045_vm8 = vcmp.gt.f32.partialorder %v3242_v53, 2.4142137  ;;  %vm1049_vm2 = vcmp.gt.f32.partialorder %v3242_v53, 0.41421357  ;;  %v3287_v37 = vand.u32 2147483647, %v3265_v42 }
 0x3b7   :  { %v1075_v12 = vsel %vm3253_vm9, %v1071_v17, 1.0  ;;  %vm1052_vm7 = vmxor %vm1044_vm11, %vm2496_vm13  ;;  %v2243_v0 = vadd.f32 -1.0, %v3239_v34  ;;  %v2244_v35 = vadd.f32 -1.0, %v3242_v53  ;;  %v1063_v48 = vsel %vm3253_vm9, %v2242_v49, %v3232_v39 }
 0x3b8   :  { %v1079_v33 = vsel %vm1043_vm15, %v3232_v39, %v1075_v12  ;;  %vm3270_vm12 = vmand %vm1048_vm10, %vm1052_vm7  ;;  %vm1046_vm7 = vcmp.gt.f32.partialorder %v3287_v37, 2.4142137  ;;  %vm1050_vm10 = vcmp.gt.f32.partialorder %v3287_v37, 0.41421357  ;;  %v1074_v58 = vadd.f32 1.0, %v3287_v37 }
 0x3b9   :  { %2351 = vrcp.f32 %v1079_v33  ;;  %v1076_v26 = vsel %vm3270_vm12, %v1072_v27, 1.0  ;;  %vm1053_vm14 = vmxor %vm1045_vm8, %vm2496_vm13  ;;  %v1064_v41 = vsel %vm3270_vm12, %v2243_v0, %v3239_v34  ;;  %v2245_v51 = vadd.f32 -1.0, %v3287_v37 }
 0x3ba   :  { %v1080_v63 = vsel %vm1044_vm11, %v3239_v34, %v1076_v26  ;;  %vm3282_vm6 = vmand %vm1049_vm2, %vm1053_vm14  ;;  %v1067_v27 = vsel %vm1043_vm15, -1.0, %v1063_v48 }
 0x3bb   :  { %2353 = vrcp.f32 %v1080_v63  ;;  %v1077_v22 = vsel %vm3282_vm6, %v1073_v20, 1.0  ;;  %vm1054_vm2 = vmxor %vm1046_vm7, %vm2496_vm13  ;;  %v1065_v32 = vsel %vm3282_vm6, %v2244_v35, %v3242_v53  ;;  %v1105_v21 = vsel %vm3282_vm6, 0.7853982, %v4133_v18 }
 0x3bc   :  { %v1081_v54 = vsel %vm1045_vm8, %v3242_v53, %v1077_v22  ;;  %vm3300_vm14 = vmand %vm1050_vm10, %vm1054_vm2  ;;  %v1069_v22 = vsel %vm1045_vm8, -1.0, %v1065_v32  ;;  %v1109_v39 = vsel %vm1045_vm8, 1.5707964, %v1105_v21  ;;  %vm1155_vm6 = vcmp.lt.f32.partialorder %v3229_v50, 0.0  ;;  %v105_v53 = vld [vmem:[%s4046_s2] sm:$0xff] }
 0x3bd   :  { %2355 = vrcp.f32 %v1081_v54  ;;  %v1078_v25 = vsel %vm3300_vm14, %v1074_v58, 1.0  ;;  %v1066_v58 = vsel %vm3300_vm14, %v2245_v51, %v3287_v37  ;;  %v1106_v10 = vsel %vm3300_vm14, 0.7853982, %v4133_v18 }
 0x3be   :  { %v1082_v28 = vsel %vm1046_vm7, %v3287_v37, %v1078_v25  ;;  %v1070_v48 = vsel %vm1046_vm7, -1.0, %v1066_v58  ;;  %vm1156_vm8 = vcmp.lt.f32.partialorder %v3234_v36, 0.0  ;;  %v1110_v14 = vsel %vm1046_vm7, 1.5707964, %v1106_v10 }
 0x3bf   :  { %2357 = vrcp.f32 %v1082_v28  ;;  %vm4157_vm7 = vcmask 1041408   ;;  %vm4159_vm2 = vcmask 1043456  }
 0x3c0   :  { %vm4158_vm10 = vmmov %vm4157_vm7 }
 0x3c1   :  { %vm4160_vm14 = vmmov %vm4159_vm2 }
 0x3c3   :  { %v2352_v55 = vpop.eup %2351 }
 0x3c4   :  { %v1087_v56 = vmul.f32 %v2352_v55, %v1079_v33 }
 0x3c5   :  { %v2354_v46 = vpop.eup %2353 }
 0x3c6   :  { %v1091_v8 = vsub.f32 2.0, %v1087_v56  ;;  %v1088_v9 = vmul.f32 %v2354_v46, %v1080_v63  ;;  %v1068_v63 = vsel %vm1044_vm11, -1.0, %v1064_v41 }
 0x3c7   :  { %v2356_v29 = vpop.eup %2355 }
 0x3c8   :  { %v1095_v45 = vmul.f32 %v2352_v55, %v1091_v8  ;;  %v1092_v19 = vsub.f32 2.0, %v1088_v9  ;;  %v1089_v17 = vmul.f32 %v2356_v29, %v1081_v54 }
 0x3c9   :  { %v2358_v26 = vpop.eup %2357 }
 0x3ca   :  { %v1099_v12 = vmul.f32 %v1095_v45, %v1067_v27  ;;  %v1096_v20 = vmul.f32 %v2354_v46, %v1092_v19  ;;  %v1093_v33 = vsub.f32 2.0, %v1089_v17  ;;  %v1090_v55 = vmul.f32 %v2358_v26, %v1082_v28 }
 0x3cc   :  { %v1111_v25 = vmul.f32 %v1099_v12, %v1099_v12  ;;  %v1100_v49 = vmul.f32 %v1096_v20, %v1068_v63  ;;  %v1097_v54 = vmul.f32 %v2356_v29, %v1093_v33  ;;  %v1094_v46 = vsub.f32 2.0, %v1090_v55 }
 0x3ce   :  { %v1115_v0 = vmul.f32 0.080537446, %v1111_v25  ;;  %v1112_v56 = vmul.f32 %v1100_v49, %v1100_v49  ;;  %v1101_v35 = vmul.f32 %v1097_v54, %v1069_v22  ;;  %v1098_v45 = vmul.f32 %v2358_v26, %v1094_v46 }
 0x3cf   :  { %v1103_v26 = vsel %vm3253_vm9, 0.7853982, %v4133_v18  ;;  %vm1157_vm9 = vcmp.lt.f32.partialorder %v3236_v52, 0.0 }
 0x3d0   :  { %v2246_v8 = vadd.f32 -0.13877685, %v1115_v0  ;;  %v1116_v9 = vmul.f32 0.080537446, %v1112_v56  ;;  %v1113_v41 = vmul.f32 %v1101_v35, %v1101_v35  ;;  %v1102_v27 = vmul.f32 %v1098_v45, %v1070_v48 }
 0x3d2   :  { %v1123_v19 = vmul.f32 %v2246_v8, %v1111_v25  ;;  %v2247_v32 = vadd.f32 -0.13877685, %v1116_v9  ;;  %v1117_v17 = vmul.f32 0.080537446, %v1113_v41  ;;  %v1114_v29 = vmul.f32 %v1102_v27, %v1102_v27 }
 0x3d3   :  { %v1104_v9 = vsel %vm3270_vm12, 0.7853982, %v4133_v18  ;;  %vm4156_vm12 = vcmp.lt.s32.totalorder %v2687_v40, 15 }
 0x3d4   :  { %v1127_v51 = vadd.f32 0.19977711, %v1123_v19  ;;  %v1124_v13 = vmul.f32 %v2247_v32, %v1112_v56  ;;  %v2248_v20 = vadd.f32 -0.13877685, %v1117_v17  ;;  %v1118_v22 = vmul.f32 0.080537446, %v1114_v29 }
 0x3d5   :  { %v1107_v17 = vsel %vm1043_vm15, 1.5707964, %v1103_v26  ;;  %v4149_v26 = vld [vmem:[#allocation12_spill] sm:$0xff]  ;;  %vm4155_vm15 = vcmp.lt.s32.totalorder %v2687_v40, 112 }
 0x3d6   :  { %v1131_v28 = vmul.f32 %v1127_v51, %v1111_v25  ;;  %v1128_v33 = vadd.f32 0.19977711, %v1124_v13  ;;  %v1125_v63 = vmul.f32 %v2248_v20, %v1113_v41  ;;  %v2249_v58 = vadd.f32 -0.13877685, %v1118_v22 }
 0x3d8   :  { %v2250_v54 = vadd.f32 -0.3333295, %v1131_v28  ;;  %v1132_v55 = vmul.f32 %v1128_v33, %v1112_v56  ;;  %v1129_v43 = vadd.f32 0.19977711, %v1125_v63  ;;  %v1126_v48 = vmul.f32 %v2249_v58, %v1114_v29 }
 0x3d9   :  { %v1108_v28 = vsel %vm1044_vm11, 1.5707964, %v1104_v9  ;;  %vm1158_vm11 = vcmp.lt.f32.partialorder %v3265_v42, 0.0 }
 0x3da   :  { %v1139_v0 = vmul.f32 %v2250_v54, %v1111_v25  ;;  %v2251_v46 = vadd.f32 -0.3333295, %v1132_v55  ;;  %v1133_v8 = vmul.f32 %v1129_v43, %v1113_v41  ;;  %v1130_v32 = vadd.f32 0.19977711, %v1126_v48 }
 0x3dc   :  { %v1143_v45 = vmul.f32 %v1139_v0, %v1099_v12  ;;  %v1140_v13 = vmul.f32 %v2251_v46, %v1112_v56  ;;  %v2252_v19 = vadd.f32 -0.3333295, %v1133_v8  ;;  %v1134_v43 = vmul.f32 %v1130_v32, %v1114_v29 }
 0x3dd   :  { %v116_v0 = vrot.slane %v109_v44, %v4149_v26 }
 0x3de   :  { %v1147_v51 = vadd.f32 %v1143_v45, %v1107_v17  ;;  %v1144_v25 = vmul.f32 %v1140_v13, %v1100_v49  ;;  %v1141_v20 = vmul.f32 %v2252_v19, %v1113_v41  ;;  %v2253_v22 = vadd.f32 -0.3333295, %v1134_v43 }
 0x3e0   :  { %v1151_v33 = vadd.f32 %v1147_v51, %v1099_v12  ;;  %v1148_v63 = vadd.f32 %v1144_v25, %v1108_v28  ;;  %v1145_v56 = vmul.f32 %v1141_v20, %v1101_v35  ;;  %v1142_v41 = vmul.f32 %v2253_v22, %v1114_v29  ;;  %v4153_v25 = vld [vmem:[#allocation13_spill] sm:$0xff] }
 0x3e2   :  { %v1159_v54 = vsub.f32 0.0, %v1151_v33  ;;  %v1152_v55 = vadd.f32 %v1148_v63, %v1100_v49  ;;  %v1149_v58 = vadd.f32 %v1145_v56, %v1109_v39  ;;  %v1146_v8 = vmul.f32 %v1142_v41, %v1102_v27 }
 0x3e4   :  { %v1163_v34 = vsel %vm1155_vm6, %v1159_v54, %v1151_v33  ;;  %v1160_v12 = vsub.f32 0.0, %v1152_v55  ;;  %v1153_v46 = vadd.f32 %v1149_v58, %v1101_v35  ;;  %v1150_v9 = vadd.f32 %v1146_v8, %v1110_v14  ;;  %v122_v33 = vpop.permute.xlu1 %121 }
 0x3e5   :  { %v3356_v48 = vmul.f32 0.636, %v1163_v34  ;;  %v118_v35 = vadd.f32 %v116_v0, %v105_v53  ;;  %vm4161_vm6 = vcmask 1045504  }
 0x3e6   :  { %v1164_v49 = vsel %vm1156_vm8, %v1160_v12, %v1152_v55  ;;  %v1161_v29 = vsub.f32 0.0, %v1153_v46  ;;  %v1154_v32 = vadd.f32 %v1150_v9, %v1102_v27  ;;  %v1187_v55 = vrot.slane %v3229_v50, 2  ;;  %vm4162_vm8 = vmmov %vm4156_vm12 }
 0x3e7   :  { %4150 = vst [vmem:[#allocation18_spill] sm:$0xff] %v3356_v48  ;;  %v1171_v45 = vmul.f32 1.442695, %v3356_v48  ;;  %v3362_v13 = vmul.f32 0.636, %v1164_v49  ;;  %v132_v20 = vrot.slane %v118_v35, %v4153_v25  ;;  %v125_v28 = vcombine.high %v118_v35, %v118_v35 }
 0x3e8   :  { %v1165_v19 = vsel %vm1157_vm9, %v1161_v29, %v1153_v46  ;;  %v1162_v51 = vsub.f32 0.0, %v1154_v32  ;;  %v1188_v12 = vrot.slane %v3234_v36, 2  ;;  %v1189_v49 = vrot.slane %v3236_v52, 2  ;;  %vm4163_vm9 = vmmov %vm4161_vm6 }
 0x3e9   :  { %4151 = vst [vmem:[#allocation19_spill] sm:$0xff] %v3362_v13  ;;  %2359 = vpow2.f32 %v1171_v45  ;;  %v1173_v17 = vmul.f32 1.442695, %v3362_v13  ;;  %v3366_v21 = vmul.f32 0.636, %v1165_v19  ;;  %v140_v63 = vcombine.high %v132_v20, %v132_v20 }
 0x3ea   :  { %v1166_v43 = vsel %vm1158_vm11, %v1162_v51, %v1154_v32  ;;  %v139_v56 = vrot.slane %v125_v28, %v4153_v25  ;;  %v146_v22 = vmul.f32 %v132_v20, %v122_v33  ;;  %v1190_v45 = vrot.slane %v3265_v42, 2  ;;  %vm4164_vm11 = vmmov %vm4162_vm8 }
 0x3eb   :  { %4152 = vst [vmem:[#allocation23_spill] sm:$0xff] %v3366_v21  ;;  %2361 = vpow2.f32 %v1173_v17  ;;  %v1175_v37 = vmul.f32 1.442695, %v3366_v21  ;;  %v3371_v44 = vmul.f32 0.636, %v1166_v43  ;;  %v147_v10 = vmul.f32 %v140_v63, %v122_v33 }
 0x3ec   :  { %v141_v41 = vcombine.high %v139_v56, %v139_v56  ;;  %v148_v26 = vmul.f32 %v139_v56, %v122_v33 }
 0x3ed   :  { %2363 = vpow2.f32 %v1175_v37  ;;  %4154 = vst [vmem:[#allocation21_spill] sm:$0xff] %v3371_v44  ;;  %v1177_v27 = vmul.f32 1.442695, %v3371_v44 }
 0x3ee   :  { %v149_v14 = vmul.f32 %v141_v41, %v122_v33 }
 0x3ef   :  { %2365 = vpow2.f32 %v1177_v27 }
 0x3f3   :  { %v2360_v39 = vpop.eup %2359 }
 0x3f4   :  { %v1179_v54 = vmul.f32 %v2360_v39, %v146_v22 }
 0x3f5   :  { %v2362_v58 = vpop.eup %2361 }
 0x3f6   :  { %v3376_v0 = vadd.f32 %v1187_v55, %v1179_v54  ;;  %v1180_v34 = vmul.f32 %v2362_v58, %v147_v10 }
 0x3f7   :  { %v2364_v46 = vpop.eup %2363 }
 0x3f8   :  { %v3379_v8 = vadd.f32 %v1188_v12, %v1180_v34  ;;  %v1181_v53 = vmul.f32 %v2364_v46, %v148_v26  ;;  %1215 = vrot.lane.b32.xlu0 %v3376_v0, %s2488_s13 }
 0x3f9   :  { %v2366_v50 = vpop.eup %2365 }
 0x3fa   :  { %1217 = vrot.lane.b32.xlu1 %v3379_v8, %s2488_s13  ;;  %v3386_v29 = vadd.f32 %v1189_v49, %v1181_v53  ;;  %v1182_v9 = vmul.f32 %v2366_v50, %v149_v14  ;;  %v2107_v36 = vcombine.low %v3376_v0, %v3379_v8 }
 0x3fc   :  { %1263 = vrot.lane.b32.xlu0 %v3376_v0, %s2487_s12  ;;  %v3393_v35 = vadd.f32 %v1190_v45, %v1182_v9  ;;  %v2115_v19 = vrot.slane %v2107_v36, %v4153_v25 }
 0x3fe   :  { %1265 = vrot.lane.b32.xlu1 %v3379_v8, %s2487_s12  ;;  %v2108_v52 = vcombine.low %v3386_v29, %v3393_v35 }
 0x400   :  { %1231 = vrot.lane.b32.xlu0 %v3376_v0, %s2489_s1  ;;  %v2122_v42 = vrot.slane %v2108_v52, %v4153_v25 }
 0x402   :  { %1233 = vrot.lane.b32.xlu1 %v3379_v8, %s2489_s1  ;;  %v2123_v32 = vcombine.low %v2115_v19, %v2122_v42 }
 0x404   :  { %1279 = vrot.lane.b32.xlu0 %v3376_v0, %s2490_s14  ;;  %2125 = vst [vmem:[#allocation5] sm:$0xff] %v2123_v32 }
 0x406   :  { %1281 = vrot.lane.b32.xlu1 %v3379_v8, %s2490_s14 }
 0x408   :  { %1199 = vrot.lane.b32.xlu0 %v3376_v0, %s2491_s15 }
 0x40a   :  { %1201 = vrot.lane.b32.xlu1 %v3379_v8, %s2491_s15 }
 0x40c   :  { %1247 = vrot.lane.b32.xlu0 %v3376_v0, %s2492_s16 }
 0x40e   :  { %1249 = vrot.lane.b32.xlu1 %v3379_v8, %s2492_s16 }
 0x410   :  { %1295 = vrot.lane.b32.xlu0 %v3376_v0, %s2493_s17 }
 0x412   :  { %1297 = vrot.lane.b32.xlu1 %v3379_v8, %s2493_s17 }
 0x414   :  { %1219 = vrot.lane.b32.xlu0 %v3386_v29, %s2488_s13 }
 0x416   :  { %1221 = vrot.lane.b32.xlu1 %v3393_v35, %s2488_s13 }
 0x418   :  { %1267 = vrot.lane.b32.xlu0 %v3386_v29, %s2487_s12 }
 0x41a   :  { %1269 = vrot.lane.b32.xlu1 %v3393_v35, %s2487_s12 }
 0x41c   :  { %1235 = vrot.lane.b32.xlu0 %v3386_v29, %s2489_s1 }
 0x41e   :  { %1237 = vrot.lane.b32.xlu1 %v3393_v35, %s2489_s1 }
 0x420   :  { %1283 = vrot.lane.b32.xlu0 %v3386_v29, %s2490_s14 }
 0x422   :  { %1285 = vrot.lane.b32.xlu1 %v3393_v35, %s2490_s14 }
 0x424   :  { %1203 = vrot.lane.b32.xlu0 %v3386_v29, %s2491_s15 }
 0x426   :  { %1205 = vrot.lane.b32.xlu1 %v3393_v35, %s2491_s15 }
 0x428   :  { %1251 = vrot.lane.b32.xlu0 %v3386_v29, %s2492_s16 }
 0x42a   :  { %1253 = vrot.lane.b32.xlu1 %v3393_v35, %s2492_s16 }
 0x42c   :  { %1299 = vrot.lane.b32.xlu0 %v3386_v29, %s2493_s17 }
 0x42e   :  { %1301 = vrot.lane.b32.xlu1 %v3393_v35, %s2493_s17 }
 0x430   :  { %1311 = vrot.lane.b32.xlu0 %v3376_v0, %s2494_s18 }
 0x432   :  { %1313 = vrot.lane.b32.xlu1 %v3379_v8, %s2494_s18 }
 0x434   :  { %1315 = vrot.lane.b32.xlu0 %v3386_v29, %s2494_s18 }
 0x436   :  { %1317 = vrot.lane.b32.xlu1 %v3393_v35, %s2494_s18 }
 0x46a   :  { %v1216_v17 = vpop.permute.xlu0 %1215 }
 0x46c   :  { %v1218_v51 = vpop.permute.xlu1 %1217 }
 0x46d   :  { %v1225_v58 = vsel %vm193_vm0, %v1216_v17, %v1218_v51 }
 0x46e   :  { %v1264_v37 = vpop.permute.xlu0 %1263  ;;  %v1228_v12 = vmul.f32 %v1225_v58, %v4134_v60 }
 0x470   :  { %v1266_v20 = vpop.permute.xlu1 %1265  ;;  %v1332_v32 = vrot.slane %v1228_v12, 6 }
 0x471   :  { %v1273_v41 = vsel %vm292_vm1, %v1264_v37, %v1266_v20 }
 0x472   :  { %v1232_v43 = vpop.permute.xlu0 %1231  ;;  %v1275_v50 = vmul.f32 %v1273_v41, %v4138_v59 }
 0x474   :  { %v1234_v28 = vpop.permute.xlu1 %1233  ;;  %v1367_v44 = vrot.slane %v1275_v50, 6 }
 0x475   :  { %v1241_v9 = vsel %vm4156_vm12, %v1232_v43, %v1234_v28  ;;  %vm4166_vm12 = vmmov %vm4157_vm7 }
 0x476   :  { %v3457_v33 = vpop.permute.xlu0 %1279  ;;  %v1244_v58 = vmul.f32 %v1241_v9, %v4136_v47 }
 0x478   :  { %v3459_v27 = vpop.permute.xlu1 %1281  ;;  %v1344_v48 = vrot.slane %v1244_v58, 4 }
 0x479   :  { %v1289_v34 = vsel %vm325_vm3, %v3457_v33, %v3459_v27 }
 0x47a   :  { %v3461_v63 = vpop.permute.xlu0 %1199  ;;  %v1291_v45 = vmul.f32 %v1289_v34, %v4140_v38 }
 0x47c   :  { %v3463_v56 = vpop.permute.xlu1 %1201  ;;  %v1379_v13 = vrot.slane %v1291_v45, 4 }
 0x47d   :  { %v1209_v46 = vsel %vm160_vm4, %v3461_v63, %v3463_v56 }
 0x47e   :  { %v3465_v22 = vpop.permute.xlu0 %1247  ;;  %v1212_v52 = vmul.f32 %v1209_v46, %v4135_v31 }
 0x480   :  { %v3467_v39 = vpop.permute.xlu1 %1249  ;;  %v1400_v50 = vsel %vm4157_vm7, %v1212_v52, %v1332_v32 }
 0x481   :  { %v1257_v53 = vsel %vm259_vm5, %v3465_v22, %v3467_v39 }
 0x482   :  { %v3469_v10 = vpop.permute.xlu0 %1295  ;;  %v1260_v19 = vmul.f32 %v1257_v53, %v2736_v62 }
 0x484   :  { %v3471_v54 = vpop.permute.xlu1 %1297 }
 0x485   :  { %v1305_v14 = vsel %vm4155_vm15, %v3469_v10, %v3471_v54  ;;  %vm4165_vm15 = vmmov %vm4162_vm8 }
 0x486   :  { %v1220_v55 = vpop.permute.xlu0 %1219  ;;  %v1307_v42 = vmul.f32 %v1305_v14, %v4137_v30 }
 0x487   :  { %v1224_v41 = vsel %vm193_vm0, %v1218_v51, %v1220_v55  ;;  %v1356_v51 = vrot.slane %v1260_v19, 2  ;;  %v1404_v19 = vsel %vm4160_vm14, %v1400_v50, %v1344_v48  ;;  %vm4174_vm14 = vcmp.lt.s32.totalorder %v2687_v40, 112 }
 0x488   :  { %v1222_v26 = vpop.permute.xlu1 %1221  ;;  %v1391_v9 = vrot.slane %v1307_v42, 2 }
 0x489   :  { %v1223_v46 = vsel %vm193_vm0, %v1220_v55, %v1222_v26  ;;  %v1226_v12 = vsel %vm193_vm0, %v1222_v26, %v1216_v17  ;;  %v1411_v55 = vsel %vm4158_vm10, %v3376_v0, %v1367_v44  ;;  %v3531_v32 = vsel %vm4163_vm9, %v1404_v19, %v1356_v51  ;;  %vm4167_vm10 = vmmov %vm4157_vm7 }
 0x48a   :  { %v1268_v49 = vpop.permute.xlu0 %1267  ;;  %v1227_v17 = vmul.f32 %v1226_v12, %v2749_v2  ;;  %vm4177_vm9 = vcmask 1043456  }
 0x48b   :  { %v1272_v21 = vsel %vm292_vm1, %v1266_v20, %v1268_v49  ;;  %v1229_v20 = vmul.f32 %v1224_v41, %v2732_v61 }
 0x48c   :  { %v1270_v36 = vpop.permute.xlu1 %1269 }
 0x48d   :  { %v1271_v34 = vsel %vm292_vm1, %v1268_v49, %v1270_v36  ;;  %v1274_v53 = vsel %vm292_vm1, %v1270_v36, %v1264_v37  ;;  %v1276_v49 = vmul.f32 %v1272_v21, %v4139_v57  ;;  %v1230_v37 = vmul.f32 %v1223_v46, %v2752_v3 }
 0x48e   :  { %v1236_v25 = vpop.permute.xlu0 %1235  ;;  %v1277_v45 = vmul.f32 %v1271_v34, %v2757_v5  ;;  %v1278_v26 = vmul.f32 %v1274_v53, %v2770_v11  ;;  %v1415_v36 = vsel %vm4159_vm2, %v1411_v55, %v1379_v13  ;;  %v1333_v44 = vrot.slane %v1229_v20, 6  ;;  %vm4171_vm2 = vmmov %vm4157_vm7 }
 0x48f   :  { %v3526_v42 = vsel %vm4161_vm6, %v1415_v36, %v1391_v9  ;;  %v1240_v21 = vsel %vm4162_vm8, %v1234_v28, %v1236_v25  ;;  %v1368_v0 = vrot.slane %v1276_v49, 6  ;;  %v1331_v13 = vrot.slane %v1227_v17, 6  ;;  %v4169_v36 = vld [vmem:[#allocation28_spill] sm:$0xff]  ;;  %vm4175_vm6 = vmmov %vm4171_vm2 }
 0x490   :  { %v1238_v14 = vpop.permute.xlu1 %1237  ;;  %v1369_v58 = vrot.slane %v1277_v45, 6  ;;  %v1334_v46 = vrot.slane %v1230_v37, 6  ;;  %v1370_v12 = vrot.slane %v1278_v26, 6  ;;  %v1245_v53 = vmul.f32 %v1240_v21, %v2746_v1  ;;  %vm4176_vm8 = vmmov %vm4171_vm2 }
 0x491   :  { %v1242_v41 = vsel %vm4164_vm11, %v1238_v14, %v1232_v43  ;;  %v1239_v48 = vsel %vm4165_vm15, %v1236_v25, %v1238_v14  ;;  %vm4178_vm11 = vmmov %vm4174_vm14 }
 0x492   :  { %v1284_v38 = vpop.permute.xlu0 %1283  ;;  %v1243_v9 = vmul.f32 %v1242_v41, %v2780_v15  ;;  %v1246_v20 = vmul.f32 %v1239_v48, %v2783_v16  ;;  %v1345_v37 = vrot.slane %v1245_v53, 4  ;;  %v4173_v53 = vld [vmem:[#allocation30_spill] sm:$0xff]  ;;  %vm4179_vm15 = vmmov %vm4178_vm11 }
 0x493   :  { %v1288_v28 = vsel %vm325_vm3, %v3459_v27, %v1284_v38 }
 0x494   :  { %v1286_v52 = vpop.permute.xlu1 %1285  ;;  %v1343_v21 = vrot.slane %v1243_v9, 4 }
 0x495   :  { %v1287_v50 = vsel %vm325_vm3, %v1284_v38, %v1286_v52  ;;  %v1290_v43 = vsel %vm325_vm3, %v1286_v52, %v3457_v33  ;;  %v1412_v38 = vsel %vm4166_vm12, %v3379_v8, %v1368_v0  ;;  %v1413_v33 = vsel %vm4157_vm7, %v3386_v29, %v1369_v58  ;;  %v4168_v29 = vld [vmem:[#allocation26_spill] sm:$0xff]  ;;  %v4170_v0 = vld [vmem:[#allocation27_spill] sm:$0xff]  ;;  %vm4182_vm12 = vmmov %vm4177_vm9 }
 0x496   :  { %v1204_v34 = vpop.permute.xlu0 %1203  ;;  %v1293_v55 = vmul.f32 %v1287_v50, %v2802_v23  ;;  %v1294_v17 = vmul.f32 %v1290_v43, %v2816_v24  ;;  %v1414_v8 = vsel %vm4167_vm10, %v3393_v35, %v1370_v12  ;;  %v4172_v35 = vld [vmem:[#allocation29_spill] sm:$0xff]  ;;  %vm4183_vm7 = vmmov %vm4177_vm9  ;;  %vm4184_vm10 = vcmask 1045504  }
 0x497   :  { %v1208_v25 = vsel %vm160_vm4, %v3463_v56, %v1204_v34  ;;  %v1292_v56 = vmul.f32 %v1288_v28, %v2754_v4 }
 0x498   :  { %v1206_v51 = vpop.permute.xlu1 %1205  ;;  %v1213_v26 = vmul.f32 %v1208_v25, %v4168_v29  ;;  %v1382_v9 = vrot.slane %v1294_v17, 4 }
 0x499   :  { %v1207_v14 = vsel %vm160_vm4, %v1204_v34, %v1206_v51  ;;  %v1210_v27 = vsel %vm160_vm4, %v1206_v51, %v3461_v63  ;;  %v1380_v43 = vrot.slane %v1292_v56, 4  ;;  %v1381_v51 = vrot.slane %v1293_v55, 4 }
 0x49a   :  { %v1211_v49 = vmul.f32 %v1210_v27, %v2822_v7  ;;  %v1252_v45 = vpop.permute.xlu0 %1251  ;;  %v1214_v52 = vmul.f32 %v1207_v14, %v4169_v36  ;;  %v1401_v14 = vsel %vm4175_vm6, %v1213_v26, %v1333_v44  ;;  %v4181_v26 = vld [vmem:[#allocation32_spill] sm:$0xff] }
 0x49b   :  { %v1256_v63 = vsel %vm259_vm5, %v3467_v39, %v1252_v45  ;;  %v1346_v39 = vrot.slane %v1246_v20, 4 }
 0x49c   :  { %v1254_v19 = vpop.permute.xlu1 %1253  ;;  %v1261_v58 = vmul.f32 %v1256_v63, %v4170_v0  ;;  %v1399_v48 = vsel %vm4171_vm2, %v1211_v49, %v1331_v13  ;;  %v1402_v27 = vsel %vm4176_vm8, %v1214_v52, %v1334_v46  ;;  %v4180_v63 = vld [vmem:[#allocation31_spill] sm:$0xff]  ;;  %vm4185_vm2 = vmmov %vm4183_vm7 }
 0x49d   :  { %v1255_v41 = vsel %vm259_vm5, %v1252_v45, %v1254_v19  ;;  %v1258_v34 = vsel %vm259_vm5, %v1254_v19, %v3465_v22  ;;  %v1403_v49 = vsel %vm4177_vm9, %v1399_v48, %v1343_v21  ;;  %v1417_v19 = vsel %vm4182_vm12, %v1413_v33, %v1381_v51  ;;  %vm4187_vm6 = vmmov %vm4185_vm2 }
 0x49e   :  { %v1259_v12 = vmul.f32 %v1258_v34, %v4172_v35  ;;  %v1262_v28 = vmul.f32 %v1255_v41, %v4173_v53  ;;  %v1300_v50 = vpop.permute.xlu0 %1299  ;;  %v1357_v45 = vrot.slane %v1261_v58, 2  ;;  %v1405_v41 = vsel %vm4183_vm7, %v1401_v14, %v1345_v37  ;;  %vm4188_vm8 = vmmov %vm4184_vm10 }
 0x49f   :  { %v1304_v25 = vsel %vm4174_vm14, %v3471_v54, %v1300_v50  ;;  %v1416_v58 = vsel %vm4185_vm2, %v1412_v38, %v1380_v43  ;;  %vm4186_vm14 = vmmov %vm4184_vm10  ;;  %vm4189_vm9 = vcmp.lt.s32.totalorder %v2687_v40, 111 }
 0x4a0   :  { %v1355_v22 = vrot.slane %v1259_v12, 2  ;;  %v1308_v20 = vmul.f32 %v1304_v25, %v2819_v6  ;;  %v1302_v13 = vpop.permute.xlu1 %1301  ;;  %v1358_v17 = vrot.slane %v1262_v28, 2  ;;  %v1418_v28 = vsel %vm4187_vm6, %v1414_v8, %v1382_v9  ;;  %vm4192_vm12 = vmmov %vm4188_vm8 }
 0x4a1   :  { %v1303_v56 = vsel %vm4178_vm11, %v1300_v50, %v1302_v13  ;;  %v1306_v55 = vsel %vm4179_vm15, %v1302_v13, %v3469_v10  ;;  %v1409_v50 = vsel %vm4188_vm8, %v1405_v41, %v1357_v45  ;;  %vm4190_vm11 = vmmov %vm4185_vm2  ;;  %vm4197_vm6 = vcmask 1041408  }
 0x4a2   :  { %v1392_v54 = vrot.slane %v1308_v20, 2  ;;  %v1309_v44 = vmul.f32 %v1303_v56, %v4180_v63  ;;  %v1310_v46 = vmul.f32 %v1306_v55, %v4181_v26  ;;  %v1312_v52 = vpop.permute.xlu0 %1311  ;;  %v1407_v21 = vsel %vm4184_vm10, %v1403_v49, %v1355_v22  ;;  %vm4191_vm15 = vmmov %vm4188_vm8  ;;  %v3609_v20 = vld [vmem:[#allocation2 + $0x20] ss:$0 sm:$0xff]  ;;  %v3621_v56 = vld [vmem:[#allocation2 + $0x30] ss:$0 sm:$0xff] }
 0x4a3   :  { %v1406_v37 = vsel %vm4190_vm11, %v1402_v27, %v1346_v39  ;;  %v2304_v38 = vpack.c.bf16 %v3526_v42, %v1407_v21  ;;  %vm4193_vm7 = vmmov %vm4188_vm8  ;;  %v3614_v39 = vld [vmem:[#allocation2 + $0x28] ss:$0 sm:$0xff] }
 0x4a4   :  { %v1393_v34 = vrot.slane %v1309_v44, 2  ;;  %v1394_v48 = vrot.slane %v1310_v46, 2  ;;  %v1314_v12 = vpop.permute.xlu1 %1313  ;;  %v1420_v10 = vsel %vm4186_vm14, %v1416_v58, %v1392_v54  ;;  %v1410_v43 = vsel %vm4192_vm12, %v1406_v37, %v1358_v17  ;;  %vm4194_vm10 = vmmov %vm4189_vm9  ;;  %v3624_v17 = vld [vmem:[#allocation2 + $0x38] ss:$0 sm:$0xff]  ;;  %v1427_v46 = vld [vmem:[%s4050_s6] sm:$0xf] }
 0x4a5   :  { %v1321_v25 = vsel %vm4189_vm9, %v1312_v52, %v1314_v12  ;;  %v2302_v33 = vpack.c.bf16 %v1420_v10, %v3531_v32  ;;  %vm4195_vm2 = vmmov %vm4189_vm9  ;;  %vm4199_vm9 = vcmask 1042432  }
 0x4a6   :  { %v1421_v51 = vsel %vm4191_vm15, %v1417_v19, %v1393_v34  ;;  %v1316_v14 = vpop.permute.xlu0 %1315  ;;  %v1422_v22 = vsel %vm4193_vm7, %v1418_v28, %v1394_v48  ;;  %v1323_v8 = vmul.f32 %v3609_v20, %v1321_v25  ;;  %vm4196_vm14 = vmmov %vm4195_vm2 }
 0x4a7   :  { %v1320_v9 = vsel %vm4194_vm10, %v1314_v12, %v1316_v14  ;;  %2303 = vmatprep.subr.bf16.mxu0 %v2302_v33  ;;  %v2306_v32 = vpack.c.bf16 %v1422_v22, %v1410_v43  ;;  %v2308_v13 = vpack.c.bf16 %v1421_v51, %v1409_v50  ;;  %vm4198_vm8 = vmmov %vm4197_vm6  ;;  %vm4204_vm10 = vcmask 154624  }
 0x4a8   :  { %v1324_v27 = vmul.f32 %v3614_v39, %v1320_v9  ;;  %v1318_v49 = vpop.permute.xlu1 %1317  ;;  %2305 = vmatpush1.bf16.msra.mxu0 %v2304_v38  ;;  %v1423_v19 = vsel %vm4198_vm8, %v1323_v8, 1.0  ;;  %vm4200_vm11 = vmmov %vm4197_vm6  ;;  %vm4208_vm8 = vcmask 1043456  }
 0x4a9   :  { %v1319_v42 = vsel %vm4195_vm2, %v1316_v14, %v1318_v49  ;;  %v1322_v45 = vsel %vm4196_vm14, %v1318_v49, %v1312_v52  ;;  %2307 = vmatprep.subr.bf16.mxu1 %v2306_v32  ;;  %vm4201_vm15 = vmmov %vm4199_vm9 }
 0x4aa   :  { %v1325_v55 = vmul.f32 %v3621_v56, %v1319_v42  ;;  %v1326_v54 = vmul.f32 %v3624_v17, %v1322_v45  ;;  %2309 = vmatpush1.bf16.msra.mxu1 %v2308_v13  ;;  %v1424_v44 = vsel %vm4197_vm6, %v1324_v27, 1.0  ;;  %vm4202_vm12 = vmmov %vm4197_vm6  ;;  %vm4207_vm6 = vcmp.lt.s32.totalorder %v2687_v40, 15 }
 0x4ab   :  { %2254 = vmatprep.subr.msk.mxu0 %vm4199_vm9, %v1424_v44  ;;  %vm4203_vm7 = vmmov %vm4199_vm9 }
 0x4ac   :  { %v1425_v52 = vsel %vm4200_vm11, %v1325_v55, 1.0  ;;  %2255 = vmatpush1.msk.msra.mxu0 %vm4201_vm15, %v1423_v19  ;;  %v1426_v41 = vsel %vm4202_vm12, %v1326_v54, 1.0  ;;  %vm4205_vm2 = vmmov %vm4203_vm7 }
 0x4ad   :  { %2257 = vmatprep.subr.msk.mxu1 %vm4203_vm7, %v1426_v41  ;;  %2256 = vmatmul.mubr.msk.f32.vlgmr.msra.gmra.mrb[4].mxu0 %vm4204_vm10, %v1427_v46  ;;  %vm4206_vm14 = vmmov %vm4204_vm10 }
 0x4ae   :  { %2258 = vmatpush1.msk.msra.mxu1 %vm4205_vm2, %v1425_v52  ;;  %1865 = vmatprep.mubr.f32.mxu0 %v4133_v18  ;;  %vm4209_vm9 = vmmov %vm4208_vm8 }
 0x4af   :  { %2259 = vmatmul.mubr.msk.f32.vlgmr.msra.gmra.mrb[4].mxu1 %vm4206_vm14, %v1427_v46 }
 0x4b0   :  { %1936 = vmatprep.mubr.f32.mxu1 %v4133_v18 }
 0x580   :  { %v1509_v21 = vpop.f32.mrb[4].mxu0 }
 0x581   :  { %v3642_v58 = vmax.f32 %v1509_v21, 0.0  ;;  %v1511_v34 = vpop.f32.mrb[5].mxu0 }
 0x582   :  { %v3644_v48 = vmax.f32 %v1511_v34, 0.0  ;;  %v1580_v12 = vpop.f32.mrb[4].mxu1 }
 0x583   :  { %1605 = vrot.lane.b32.xlu0 %v3642_v58, %s2488_s13  ;;  %v1582_v10 = vpop.f32.mrb[5].mxu1  ;;  %v3672_v28 = vmax.f32 %v1580_v12, 0.0 }
 0x584   :  { %1607 = vrot.lane.b32.xlu1 %v3644_v48, %s2488_s13  ;;  %v3676_v50 = vmax.f32 %v1582_v10, 0.0 }
 0x587   :  { %1637 = vrot.lane.b32.xlu0 %v3642_v58, %s2492_s16 }
 0x588   :  { %1639 = vrot.lane.b32.xlu1 %v3644_v48, %s2492_s16 }
 0x58b   :  { %1589 = vrot.lane.b32.xlu0 %v3642_v58, %s2491_s15 }
 0x58c   :  { %1591 = vrot.lane.b32.xlu1 %v3644_v48, %s2491_s15 }
 0x58f   :  { %1621 = vrot.lane.b32.xlu0 %v3642_v58, %s2489_s1 }
 0x590   :  { %1623 = vrot.lane.b32.xlu1 %v3644_v48, %s2489_s1 }
 0x593   :  { %1653 = vrot.lane.b32.xlu0 %v3642_v58, %s2487_s12 }
 0x594   :  { %1655 = vrot.lane.b32.xlu1 %v3644_v48, %s2487_s12 }
 0x597   :  { %1685 = vrot.lane.b32.xlu0 %v3642_v58, %s2493_s17 }
 0x598   :  { %1687 = vrot.lane.b32.xlu1 %v3644_v48, %s2493_s17 }
 0x59b   :  { %1669 = vrot.lane.b32.xlu0 %v3642_v58, %s2490_s14 }
 0x59c   :  { %1671 = vrot.lane.b32.xlu1 %v3644_v48, %s2490_s14 }
 0x59f   :  { %1609 = vrot.lane.b32.xlu0 %v3672_v28, %s2488_s13 }
 0x5a0   :  { %1611 = vrot.lane.b32.xlu1 %v3676_v50, %s2488_s13 }
 0x5a3   :  { %1641 = vrot.lane.b32.xlu0 %v3672_v28, %s2492_s16 }
 0x5a4   :  { %1643 = vrot.lane.b32.xlu1 %v3676_v50, %s2492_s16 }
 0x5a7   :  { %1593 = vrot.lane.b32.xlu0 %v3672_v28, %s2491_s15 }
 0x5a8   :  { %1595 = vrot.lane.b32.xlu1 %v3676_v50, %s2491_s15 }
 0x5ab   :  { %1625 = vrot.lane.b32.xlu0 %v3672_v28, %s2489_s1 }
 0x5ac   :  { %1627 = vrot.lane.b32.xlu1 %v3676_v50, %s2489_s1 }
 0x5af   :  { %1657 = vrot.lane.b32.xlu0 %v3672_v28, %s2487_s12 }
 0x5b0   :  { %1659 = vrot.lane.b32.xlu1 %v3676_v50, %s2487_s12 }
 0x5b3   :  { %1689 = vrot.lane.b32.xlu0 %v3672_v28, %s2493_s17 }
 0x5b4   :  { %1691 = vrot.lane.b32.xlu1 %v3676_v50, %s2493_s17 }
 0x5b7   :  { %1673 = vrot.lane.b32.xlu0 %v3672_v28, %s2490_s14 }
 0x5b8   :  { %1675 = vrot.lane.b32.xlu1 %v3676_v50, %s2490_s14 }
 0x5bb   :  { %1701 = vrot.lane.b32.xlu0 %v3642_v58, %s2494_s18 }
 0x5bc   :  { %1703 = vrot.lane.b32.xlu1 %v3644_v48, %s2494_s18 }
 0x5bf   :  { %1705 = vrot.lane.b32.xlu0 %v3672_v28, %s2494_s18 }
 0x5c0   :  { %1707 = vrot.lane.b32.xlu1 %v3676_v50, %s2494_s18 }
 0x5f5   :  { %v1606_v25 = vpop.permute.xlu0 %1605 }
 0x5f6   :  { %v1608_v33 = vpop.permute.xlu1 %1607 }
 0x5f7   :  { %v1615_v14 = vsel %vm193_vm0, %v1606_v25, %v1608_v33 }
 0x5f8   :  { %v1618_v9 = vmul.f32 %v1615_v14, %v4134_v60 }
 0x5f9   :  { %v1638_v37 = vpop.permute.xlu0 %1637 }
 0x5fa   :  { %v1640_v51 = vpop.permute.xlu1 %1639  ;;  %v1722_v45 = vrot.slane %v1618_v9, 4 }
 0x5fb   :  { %v1647_v38 = vsel %vm259_vm5, %v1638_v37, %v1640_v51 }
 0x5fc   :  { %v1650_v32 = vmul.f32 %v1647_v38, %v2736_v62 }
 0x5fd   :  { %v1590_v43 = vpop.permute.xlu0 %1589 }
 0x5fe   :  { %v1592_v22 = vpop.permute.xlu1 %1591  ;;  %v1734_v55 = vrot.slane %v1650_v32, 4 }
 0x5ff   :  { %v1599_v8 = vsel %vm160_vm4, %v1590_v43, %v1592_v22 }
 0x600   :  { %v1602_v27 = vmul.f32 %v1599_v8, %v4135_v31 }
 0x601   :  { %v1622_v13 = vpop.permute.xlu0 %1621 }
 0x602   :  { %v1624_v49 = vpop.permute.xlu1 %1623  ;;  %v1766_v19 = vsel %vm4208_vm8, %v1602_v27, %v1722_v45 }
 0x603   :  { %v1631_v42 = vsel %vm4207_vm6, %v1622_v13, %v1624_v49 }
 0x604   :  { %v1634_v54 = vmul.f32 %v1631_v42, %v4136_v47 }
 0x605   :  { %v1654_v44 = vpop.permute.xlu0 %1653 }
 0x606   :  { %v1656_v46 = vpop.permute.xlu1 %1655  ;;  %v1770_v52 = vsel %vm4209_vm9, %v1634_v54, %v1734_v55 }
 0x607   :  { %v2310_v60 = vpack.c.bf16 %v1770_v52, %v1766_v19 }
 0x609   :  { %v3728_v41 = vpop.permute.xlu0 %1685  ;;  %2311 = vmatprep.subr.bf16.mxu0 %v2310_v60 }
 0x60a   :  { %v3730_v62 = vpop.permute.xlu1 %1687 }
 0x60d   :  { %v3732_v31 = vpop.permute.xlu0 %1669 }
 0x60e   :  { %v3734_v21 = vpop.permute.xlu1 %1671 }
 0x611   :  { %v1610_v34 = vpop.permute.xlu0 %1609 }
 0x612   :  { %v1612_v12 = vpop.permute.xlu1 %1611  ;;  %v1614_v9 = vsel %vm193_vm0, %v1608_v33, %v1610_v34  ;;  %v1663_v33 = vsel %vm292_vm1, %v1654_v44, %v1656_v46 }
 0x613   :  { %v1616_v14 = vsel %vm193_vm0, %v1612_v12, %v1606_v25  ;;  %v1613_v42 = vsel %vm193_vm0, %v1610_v34, %v1612_v12  ;;  %vm4211_vm0 = vmmov %vm4207_vm6 }
 0x614   :  { %v1617_v45 = vmul.f32 %v1616_v14, %v2749_v2  ;;  %vm4212_vm11 = vmmov %vm4211_vm0 }
 0x615   :  { %v1642_v10 = vpop.permute.xlu0 %1641  ;;  %vm4213_vm15 = vmmov %vm4211_vm0 }
 0x616   :  { %v1644_v47 = vpop.permute.xlu1 %1643  ;;  %v1646_v38 = vsel %vm259_vm5, %v1640_v51, %v1642_v10  ;;  %v1721_v34 = vrot.slane %v1617_v45, 4 }
 0x617   :  { %v1648_v8 = vsel %vm259_vm5, %v1644_v47, %v1638_v37  ;;  %v1645_v32 = vsel %vm259_vm5, %v1642_v10, %v1644_v47  ;;  %v1651_v25 = vmul.f32 %v1646_v38, %v4170_v0  ;;  %vm4210_vm5 = vcmp.lt.s32.totalorder %v2687_v40, 112 }
 0x618   :  { %v1649_v55 = vmul.f32 %v1648_v8, %v4172_v35  ;;  %v1695_v54 = vsel %vm4210_vm5, %v3728_v41, %v3730_v62  ;;  %v1652_v19 = vmul.f32 %v1645_v32, %v4173_v53  ;;  %v1619_v0 = vmul.f32 %v1614_v9, %v2732_v61 }
 0x619   :  { %v1594_v27 = vpop.permute.xlu0 %1593  ;;  %v1620_v35 = vmul.f32 %v1613_v42, %v2752_v3  ;;  %v1735_v12 = vrot.slane %v1651_v25, 4 }
 0x61a   :  { %v1596_v51 = vpop.permute.xlu1 %1595  ;;  %v1733_v10 = vrot.slane %v1649_v55, 4 }
 0x61b   :  { %v1600_v37 = vsel %vm160_vm4, %v1596_v51, %v1590_v43  ;;  %v1597_v2 = vsel %vm160_vm4, %v1594_v27, %v1596_v51  ;;  %v1598_v43 = vsel %vm160_vm4, %v1592_v22, %v1594_v27  ;;  %v1736_v22 = vrot.slane %v1652_v19, 4  ;;  %vm4214_vm4 = vmmov %vm4208_vm8 }
 0x61c   :  { %v1601_v52 = vmul.f32 %v1600_v37, %v2822_v7  ;;  %v1604_v14 = vmul.f32 %v1597_v2, %v4169_v36  ;;  %v1603_v7 = vmul.f32 %v1598_v43, %v4168_v29  ;;  %v1679_v36 = vsel %vm325_vm3, %v3732_v31, %v3734_v21  ;;  %vm4215_vm12 = vmmov %vm4214_vm4 }
 0x61d   :  { %v1626_v60 = vpop.permute.xlu0 %1625  ;;  %vm4216_vm7 = vmmov %vm4214_vm4  ;;  %v1697_v37 = vmul.f32 %v1695_v54, %v4137_v30 }
 0x61e   :  { %v1630_v47 = vsel %vm4211_vm0, %v1624_v49, %v1626_v60  ;;  %v1628_v53 = vpop.permute.xlu1 %1627  ;;  %v1723_v49 = vrot.slane %v1619_v0, 4  ;;  %v1765_v32 = vsel %vm4214_vm4, %v1601_v52, %v1721_v34  ;;  %vm4217_vm10 = vmmov %vm4214_vm4  ;;  %v1665_v0 = vmul.f32 %v1663_v33, %v4138_v59 }
 0x61f   :  { %v1635_v38 = vmul.f32 %v1630_v47, %v2746_v1  ;;  %v1629_v61 = vsel %vm4212_vm11, %v1626_v60, %v1628_v53  ;;  %v1632_v3 = vsel %vm4213_vm15, %v1628_v53, %v1622_v13  ;;  %v1724_v1 = vrot.slane %v1620_v35, 4  ;;  %vm4218_vm2 = vmmov %vm4214_vm4  ;;  %v4220_v60 = vld [vmem:[#allocation22_spill] sm:$0xff] }
 0x620   :  { %v1633_v8 = vmul.f32 %v1632_v3, %v2780_v15  ;;  %v1636_v9 = vmul.f32 %v1629_v61, %v2783_v16  ;;  %vm4219_vm14 = vmmov %vm4218_vm2  ;;  %v1681_v34 = vmul.f32 %v1679_v36, %v4220_v60 }
 0x621   :  { %v1658_v27 = vpop.permute.xlu0 %1657  ;;  %v1771_v42 = vsel %vm4215_vm12, %v1635_v38, %v1735_v12  ;;  %v1768_v51 = vsel %vm4218_vm2, %v1604_v14, %v1724_v1  ;;  %v1767_v19 = vsel %vm4219_vm14, %v1603_v7, %v1723_v49  ;;  %vm4224_vm9 = vmmov %vm4218_vm2 }
 0x622   :  { %v1769_v13 = vsel %vm4216_vm7, %v1633_v8, %v1733_v10  ;;  %v1662_v29 = vsel %vm292_vm1, %v1656_v46, %v1658_v27  ;;  %v1660_v15 = vpop.permute.xlu1 %1659  ;;  %v1772_v16 = vsel %vm4217_vm10, %v1636_v9, %v1736_v22  ;;  %v2320_v52 = vpack.c.bf16 %v1771_v42, %v1767_v19  ;;  %vm4226_vm0 = vmmov %vm4218_vm2 }
 0x623   :  { %v1661_v45 = vsel %vm292_vm1, %v1658_v27, %v1660_v15  ;;  %v1664_v25 = vsel %vm292_vm1, %v1660_v15, %v1654_v44  ;;  %v2312_v55 = vpack.c.bf16 %v1769_v13, %v1765_v32  ;;  %v2318_v2 = vpack.c.bf16 %v1772_v16, %v1768_v51  ;;  %vm4221_vm1 = vmmov %vm4210_vm5 }
 0x624   :  { %v1666_v46 = vmul.f32 %v1662_v29, %v4139_v57  ;;  %v1667_v35 = vmul.f32 %v1661_v45, %v2757_v5  ;;  %v1668_v44 = vmul.f32 %v1664_v25, %v2770_v11  ;;  %vm4222_vm6 = vmmov %vm4221_vm1  ;;  %v1757_v57 = vrot.slane %v1697_v37, 4 }
 0x625   :  { %v1690_v43 = vpop.permute.xlu0 %1689  ;;  %2313 = vmatpush1.bf16.msra.mxu0 %v2312_v55  ;;  %2319 = vmatprep.subr.bf16.mxu1 %v2318_v2  ;;  %vm4223_vm8 = vmmov %vm4221_vm1  ;;  %v1745_v10 = vrot.slane %v1665_v0, 4  ;;  %vm4232_vm7 = vcmp.lt.s32.totalorder %v2687_v40, 111 }
 0x626   :  { %v1694_v30 = vsel %vm4221_vm1, %v3730_v62, %v1690_v43  ;;  %v1692_v54 = vpop.permute.xlu1 %1691  ;;  %2321 = vmatpush1.bf16.msra.mxu1 %v2320_v52  ;;  %v1746_v47 = vrot.slane %v1666_v46, 4  ;;  %v1747_v62 = vrot.slane %v1667_v35, 4  ;;  %v1777_v14 = vsel %vm4224_vm9, %v1681_v34, %v1757_v57  ;;  %vm4225_vm5 = vmmov %vm4218_vm2 }
 0x627   :  { %v1698_v12 = vmul.f32 %v1694_v30, %v2819_v6  ;;  %v1693_v59 = vsel %vm4222_vm6, %v1690_v43, %v1692_v54  ;;  %v1696_v5 = vsel %vm4223_vm8, %v1692_v54, %v3728_v41  ;;  %v1748_v6 = vrot.slane %v1668_v44, 4  ;;  %vm4227_vm11 = vmmov %vm4226_vm0 }
 0x628   :  { %v1699_v33 = vmul.f32 %v1693_v59, %v4180_v63  ;;  %v1700_v11 = vmul.f32 %v1696_v5, %v4181_v26  ;;  %v1775_v36 = vsel %vm4226_vm0, %v3672_v28, %v1747_v62  ;;  %v1774_v49 = vsel %vm4227_vm11, %v3644_v48, %v1746_v47  ;;  %vm4228_vm15 = vmmov %vm4226_vm0 }
 0x629   :  { %v1674_v53 = vpop.permute.xlu0 %1673  ;;  %v1758_v3 = vrot.slane %v1698_v12, 4  ;;  %vm4229_vm4 = vmmov %vm4226_vm0  ;;  %vm4239_vm9 = vcmask 1044480  }
 0x62a   :  { %v1678_v38 = vsel %vm325_vm3, %v3734_v21, %v1674_v53  ;;  %v1676_v61 = vpop.permute.xlu1 %1675  ;;  %v1759_v22 = vrot.slane %v1699_v33, 4  ;;  %v1760_v7 = vrot.slane %v1700_v11, 4  ;;  %v1773_v21 = vsel %vm4225_vm5, %v3642_v58, %v1745_v10  ;;  %vm4231_vm12 = vmmov %vm4226_vm0 }
 0x62b   :  { %v1682_v41 = vmul.f32 %v1678_v38, %v2754_v4  ;;  %v1677_v63 = vsel %vm325_vm3, %v1674_v53, %v1676_v61  ;;  %v1680_v26 = vsel %vm325_vm3, %v1676_v61, %v3732_v31  ;;  %vm4230_vm3 = vmmov %vm4226_vm0  ;;  %v2316_v42 = vpack.c.bf16 %v1777_v14, %v1773_v21 }
 0x62c   :  { %v1683_v8 = vmul.f32 %v1677_v63, %v2802_v23  ;;  %v1684_v9 = vmul.f32 %v1680_v26, %v2816_v24  ;;  %v1776_v23 = vsel %vm4230_vm3, %v3676_v50, %v1748_v6  ;;  %vm4233_vm10 = vmmov %vm4232_vm7 }
 0x62d   :  { %v1702_v4 = vpop.permute.xlu0 %1701  ;;  %v1778_v1 = vsel %vm4228_vm15, %v1682_v41, %v1758_v3  ;;  %vm4234_vm2 = vmmov %vm4232_vm7  ;;  %vm4243_vm15 = vcmask 302080  }
 0x62e   :  { %v1779_v31 = vsel %vm4229_vm4, %v1683_v8, %v1759_v22  ;;  %v1704_v32 = vpop.permute.xlu1 %1703  ;;  %v2314_v27 = vpack.c.bf16 %v1778_v1, %v1774_v49  ;;  %v1780_v24 = vsel %vm4231_vm12, %v1684_v9, %v1760_v7  ;;  %vm4235_vm14 = vmmov %vm4234_vm2 }
 0x62f   :  { %v1711_v58 = vsel %vm4232_vm7, %v1702_v4, %v1704_v32  ;;  %v2322_v28 = vpack.c.bf16 %v1780_v24, %v1776_v23  ;;  %v2324_v13 = vpack.c.bf16 %v1779_v31, %v1775_v36  ;;  %vm4236_vm1 = vmmov %vm4226_vm0 }
 0x630   :  { %2315 = vmatprep.subr.bf16.mxu0 %v2314_v27  ;;  %v1713_v48 = vmul.f32 %v3609_v20, %v1711_v58  ;;  %v1785_v20 = vld [vmem:[%s4051_s7] sm:$0xf]  ;;  %vm4237_vm6 = vmmov %vm4226_vm0  ;;  %s2497_s7 = smov [#allocation6]  }
 0x631   :  { %v1706_v29 = vpop.permute.xlu0 %1705  ;;  %2317 = vmatpush1.bf16.msra.mxu0 %v2316_v42  ;;  %2323 = vmatprep.subr.bf16.mxu1 %v2322_v28  ;;  %vm4238_vm8 = vmmov %vm4226_vm0  ;;  %s2198_s28 = sshll.u32 %s2497_s7, 4  ;;  %s2199_s28 = int_to_ptr.vmem [resolvable:$true] %s2198_s28 }
 0x632   :  { %v1710_v15 = vsel %vm4233_vm10, %v1704_v32, %v1706_v29  ;;  %2325 = vmatpush1.bf16.msra.mxu1 %v2324_v13  ;;  %v1708_v16 = vpop.permute.xlu1 %1707  ;;  %v1781_v19 = vsel %vm4237_vm6, %v1713_v48, 1.0  ;;  %vm4240_vm5 = vmmov %vm4226_vm0  ;;  %s2409_s0 = scalar_lea.vmem %s2199_s28, 128  ;;  %p2414_p9 = scmp.lt.s32.totalorder %s2199_s28, %s2199_s28 }
 0x633   :  { %v1714_v50 = vmul.f32 %v3614_v39, %v1710_v15  ;;  %v1709_v45 = vsel %vm4234_vm2, %v1706_v29, %v1708_v16  ;;  %v1712_v25 = vsel %vm4235_vm14, %v1708_v16, %v1702_v4  ;;  %vm4241_vm0 = vmmov %vm4239_vm9  ;;  %p2410_p8 = scmp.ne.s32.totalorder %s2199_s28, %s2409_s0  ;;  %p2415_p10 = scmp.lt.s32.totalorder %s2409_s0, %s2409_s0 }
 0x634   :  { %v1715_v55 = vmul.f32 %v3621_v56, %v1709_v45  ;;  %v1716_v51 = vmul.f32 %v3624_v17, %v1712_v25  ;;  %vm4242_vm11 = vmmov %vm4241_vm0 }
 0x635   :  { %v1782_v37 = vsel %vm4236_vm1, %v1714_v50, 1.0  ;;  %vm4244_vm4 = vmmov %vm4241_vm0  ;;  %p2416_p11 = por %p2415_p10, %p2414_p9 }
 0x636   :  { %v1783_v39 = vsel %vm4238_vm8, %v1715_v55, 1.0  ;;  %2260 = vmatprep.subr.msk.mxu0 %vm4239_vm9, %v1782_v37  ;;  %v1784_v2 = vsel %vm4240_vm5, %v1716_v51, 1.0  ;;  %vm4245_vm3 = vmmov %vm4243_vm15 }
 0x637   :  { %2261 = vmatpush1.msk.msra.mxu0 %vm4241_vm0, %v1781_v19  ;;  %2263 = vmatprep.subr.msk.mxu1 %vm4242_vm11, %v1784_v2  ;;  %p2417_p12 = pnand %p2416_p11, %p2410_p8 }
 0x638   :  { %2262 = vmatmul.mubr.msk.f32.vlgmr.msra.gmra.mrb[6].mxu0 %vm4243_vm15, %v1785_v20  ;;  %2264 = vmatpush1.msk.msra.mxu1 %vm4244_vm4, %v1783_v39 }
 0x639   :  { %2265 = vmatmul.mubr.msk.f32.vlgmr.msra.gmra.mrb[6].mxu1 %vm4245_vm3, %v1785_v20 }
 0x70b   :  { %v3859_v40 = vpop.f32.mrb[6].mxu0 }
 0x70c   :  { %v3862_v56 = vand.u32 2147483647, %v3859_v40  ;;  %v3864_v17 = vpop.f32.mrb[7].mxu0  ;;  %v3866_v0 = vpop.f32.mrb[6].mxu1 }
 0x70d   :  { %v3869_v46 = vand.u32 2147483647, %v3864_v17  ;;  %v3872_v35 = vand.u32 2147483647, %v3866_v0  ;;  %v3895_v30 = vpop.f32.mrb[7].mxu1 }
 0x70e   :  { %vm1947_vm12 = vcmp.gt.f32.partialorder %v3862_v56, 2.4142137  ;;  %vm1951_vm7 = vcmp.gt.f32.partialorder %v3862_v56, 0.41421357  ;;  %v1975_v43 = vadd.f32 1.0, %v3862_v56  ;;  %v2266_v6 = vadd.f32 -1.0, %v3862_v56 }
 0x70f   :  { %vm1955_vm10 = vmxor %vm1947_vm12, %vm2496_vm13  ;;  %vm1948_vm2 = vcmp.gt.f32.partialorder %v3869_v46, 2.4142137  ;;  %vm1952_vm14 = vcmp.gt.f32.partialorder %v3869_v46, 0.41421357  ;;  %v1976_v52 = vadd.f32 1.0, %v3869_v46  ;;  %v1977_v44 = vadd.f32 1.0, %v3872_v35 }
 0x710   :  { %vm3883_vm1 = vmand %vm1951_vm7, %vm1955_vm10  ;;  %vm1949_vm6 = vcmp.gt.f32.partialorder %v3872_v35, 2.4142137  ;;  %vm1953_vm9 = vcmp.gt.f32.partialorder %v3872_v35, 0.41421357  ;;  %v3917_v33 = vand.u32 2147483647, %v3895_v30 }
 0x711   :  { %v1979_v34 = vsel %vm3883_vm1, %v1975_v43, 1.0  ;;  %vm1956_vm8 = vmxor %vm1948_vm2, %vm2496_vm13  ;;  %v2267_v3 = vadd.f32 -1.0, %v3869_v46  ;;  %v1967_v63 = vsel %vm3883_vm1, %v2266_v6, %v3862_v56  ;;  %v2268_v7 = vadd.f32 -1.0, %v3872_v35 }
 0x712   :  { %v1983_v54 = vsel %vm1947_vm12, %v3862_v56, %v1979_v34  ;;  %vm3900_vm5 = vmand %vm1952_vm14, %vm1956_vm8  ;;  %vm1950_vm15 = vcmp.gt.f32.partialorder %v3917_v33, 2.4142137  ;;  %vm1954_vm4 = vcmp.gt.f32.partialorder %v3917_v33, 0.41421357  ;;  %v1978_v47 = vadd.f32 1.0, %v3917_v33 }
 0x713   :  { %2367 = vrcp.f32 %v1983_v54  ;;  %v1980_v59 = vsel %vm3900_vm5, %v1976_v52, 1.0  ;;  %vm1957_vm0 = vmxor %vm1949_vm6, %vm2496_vm13  ;;  %v1968_v21 = vsel %vm3900_vm5, %v2267_v3, %v3869_v46  ;;  %v1971_v49 = vsel %vm1947_vm12, -1.0, %v1967_v63 }
 0x714   :  { %v1984_v5 = vsel %vm1948_vm2, %v3869_v46, %v1980_v59  ;;  %vm3912_vm11 = vmand %vm1953_vm9, %vm1957_vm0  ;;  %v2269_v1 = vadd.f32 -1.0, %v3917_v33  ;;  %v1972_v58 = vsel %vm1948_vm2, -1.0, %v1968_v21  ;;  %vm2061_vm10 = vcmp.lt.f32.partialorder %v3866_v0, 0.0 }
 0x715   :  { %2369 = vrcp.f32 %v1984_v5  ;;  %v1981_v11 = vsel %vm3912_vm11, %v1977_v44, 1.0  ;;  %vm1958_vm3 = vmxor %vm1950_vm15, %vm2496_vm13  ;;  %v1969_v27 = vsel %vm3912_vm11, %v2268_v7, %v3872_v35  ;;  %v2009_v60 = vsel %vm3912_vm11, 0.7853982, %v4133_v18 }
 0x716   :  { %v1985_v10 = vsel %vm1949_vm6, %v3872_v35, %v1981_v11  ;;  %vm3930_vm7 = vmand %vm1954_vm4, %vm1958_vm3  ;;  %v1973_v48 = vsel %vm1949_vm6, -1.0, %v1969_v27  ;;  %vm2059_vm13 = vcmp.lt.f32.partialorder %v3859_v40, 0.0  ;;  %vm4256_vm14 = vcmask 1041408  }
 0x717   :  { %2371 = vrcp.f32 %v1985_v10  ;;  %v1982_v53 = vsel %vm3930_vm7, %v1978_v47, 1.0  ;;  %v1970_v15 = vsel %vm3930_vm7, %v2269_v1, %v3917_v33  ;;  %v2010_v56 = vsel %vm3930_vm7, 0.7853982, %v4133_v18 }
 0x718   :  { %v1986_v14 = vsel %vm1950_vm15, %v3917_v33, %v1982_v53  ;;  %v1974_v19 = vsel %vm1950_vm15, -1.0, %v1970_v15  ;;  %v2014_v35 = vsel %vm1950_vm15, 1.5707964, %v2010_v56  ;;  %v4266_v56 = vld [vmem:[#allocation13_spill] sm:$0xff] }
 0x719   :  { %2373 = vrcp.f32 %v1986_v14 }
 0x71d   :  { %v2368_v38 = vpop.eup %2367 }
 0x71e   :  { %v1991_v61 = vmul.f32 %v2368_v38, %v1983_v54 }
 0x71f   :  { %v2370_v41 = vpop.eup %2369 }
 0x720   :  { %v1995_v26 = vsub.f32 2.0, %v1991_v61  ;;  %v1992_v22 = vmul.f32 %v2370_v41, %v1984_v5  ;;  %v2007_v61 = vsel %vm3883_vm1, 0.7853982, %v4133_v18  ;;  %vm4257_vm1 = vmmov %vm4256_vm14 }
 0x721   :  { %v2372_v8 = vpop.eup %2371  ;;  %vm4261_vm8 = vmmov %vm4257_vm1 }
 0x722   :  { %v1999_v9 = vmul.f32 %v2368_v38, %v1995_v26  ;;  %v1996_v36 = vsub.f32 2.0, %v1992_v22  ;;  %v1993_v4 = vmul.f32 %v2372_v8, %v1985_v10  ;;  %v2008_v22 = vsel %vm3900_vm5, 0.7853982, %v4133_v18 }
 0x723   :  { %v2374_v24 = vpop.eup %2373  ;;  %v2012_v27 = vsel %vm1948_vm2, 1.5707964, %v2008_v22  ;;  %vm2062_vm2 = vcmp.lt.f32.partialorder %v3895_v30, 0.0 }
 0x724   :  { %v2003_v31 = vmul.f32 %v1999_v9, %v1971_v49  ;;  %v2000_v32 = vmul.f32 %v2370_v41, %v1996_v36  ;;  %v1997_v23 = vsub.f32 2.0, %v1993_v4  ;;  %v1994_v29 = vmul.f32 %v2374_v24, %v1986_v14 }
 0x725   :  { %v2011_v36 = vsel %vm1947_vm12, 1.5707964, %v2007_v61  ;;  %vm2060_vm12 = vcmp.lt.f32.partialorder %v3864_v17, 0.0 }
 0x726   :  { %v2015_v42 = vmul.f32 %v2003_v31, %v2003_v31  ;;  %v2004_v28 = vmul.f32 %v2000_v32, %v1972_v58  ;;  %v2001_v13 = vmul.f32 %v2372_v8, %v1997_v23  ;;  %v1998_v25 = vsub.f32 2.0, %v1994_v29 }
 0x728   :  { %v2019_v16 = vmul.f32 0.080537446, %v2015_v42  ;;  %v2016_v50 = vmul.f32 %v2004_v28, %v2004_v28  ;;  %v2005_v45 = vmul.f32 %v2001_v13, %v1973_v48  ;;  %v2002_v20 = vmul.f32 %v2374_v24, %v1998_v25 }
 0x72a   :  { %v2270_v55 = vadd.f32 -0.13877685, %v2019_v16  ;;  %v2020_v51 = vmul.f32 0.080537446, %v2016_v50  ;;  %v2017_v37 = vmul.f32 %v2005_v45, %v2005_v45  ;;  %v2006_v52 = vmul.f32 %v2002_v20, %v1974_v19 }
 0x72c   :  { %v2027_v39 = vmul.f32 %v2270_v55, %v2015_v42  ;;  %v2271_v2 = vadd.f32 -0.13877685, %v2020_v51  ;;  %v2021_v43 = vmul.f32 0.080537446, %v2017_v37  ;;  %v2018_v59 = vmul.f32 %v2006_v52, %v2006_v52 }
 0x72e   :  { %v2031_v34 = vadd.f32 0.19977711, %v2027_v39  ;;  %v2028_v44 = vmul.f32 %v2271_v2, %v2016_v50  ;;  %v2272_v54 = vadd.f32 -0.13877685, %v2021_v43  ;;  %v2022_v47 = vmul.f32 0.080537446, %v2018_v59 }
 0x72f   :  { %v4255_v39 = vld [vmem:[#allocation19_spill] sm:$0xff] }
 0x730   :  { %v2035_v5 = vmul.f32 %v2031_v34, %v2015_v42  ;;  %v2032_v11 = vadd.f32 0.19977711, %v2028_v44  ;;  %v2029_v10 = vmul.f32 %v2272_v54, %v2017_v37  ;;  %v2273_v38 = vadd.f32 -0.13877685, %v2022_v47 }
 0x732   :  { %v2274_v53 = vadd.f32 -0.3333295, %v2035_v5  ;;  %v2036_v14 = vmul.f32 %v2032_v11, %v2016_v50  ;;  %v2033_v6 = vadd.f32 0.19977711, %v2029_v10  ;;  %v2030_v26 = vmul.f32 %v2273_v38, %v2018_v59 }
 0x734   :  { %v2043_v3 = vmul.f32 %v2274_v53, %v2015_v42  ;;  %v2275_v41 = vadd.f32 -0.3333295, %v2036_v14  ;;  %v2037_v63 = vmul.f32 %v2033_v6, %v2017_v37  ;;  %v2034_v21 = vadd.f32 0.19977711, %v2030_v26  ;;  %v4259_v53 = vld [vmem:[#allocation21_spill] sm:$0xff] }
 0x735   :  { %v2013_v42 = vsel %vm1949_vm6, 1.5707964, %v2009_v60  ;;  %vm4260_vm6 = vmmov %vm4257_vm1  ;;  %v2091_v26 = vrot.slane %v3859_v40, 2  ;;  %v2094_v40 = vrot.slane %v3895_v30, 2 }
 0x736   :  { %v2047_v7 = vmul.f32 %v2043_v3, %v2003_v31  ;;  %v2044_v8 = vmul.f32 %v2275_v41, %v2016_v50  ;;  %v2276_v9 = vadd.f32 -0.3333295, %v2037_v63  ;;  %v2038_v32 = vmul.f32 %v2034_v21, %v2018_v59  ;;  %v4262_v41 = vld [vmem:[#allocation14_spill] sm:$0xff] }
 0x737   :  { %v2092_v21 = vrot.slane %v3864_v17, 2 }
 0x738   :  { %v2051_v4 = vadd.f32 %v2047_v7, %v2011_v36  ;;  %v2048_v49 = vmul.f32 %v2044_v8, %v2004_v28  ;;  %v2045_v1 = vmul.f32 %v2276_v9, %v2017_v37  ;;  %v2277_v58 = vadd.f32 -0.3333295, %v2038_v32  ;;  %v4263_v8 = vld [vmem:[#allocation15_spill] sm:$0xff] }
 0x739   :  { %v2093_v32 = vrot.slane %v3866_v0, 2 }
 0x73a   :  { %v2055_v12 = vadd.f32 %v2051_v4, %v2003_v31  ;;  %v2052_v23 = vadd.f32 %v2048_v49, %v2012_v27  ;;  %v2049_v24 = vmul.f32 %v2045_v1, %v2005_v45  ;;  %v2046_v48 = vmul.f32 %v2277_v58, %v2018_v59  ;;  %v4258_v59 = vld [vmem:[#allocation23_spill] sm:$0xff]  ;;  %v4264_v4 = vld [vmem:[#allocation16_spill] sm:$0xff] }
 0x73c   :  { %v2063_v57 = vsub.f32 0.0, %v2055_v12  ;;  %v2056_v13 = vadd.f32 %v2052_v23, %v2004_v28  ;;  %v2053_v29 = vadd.f32 %v2049_v24, %v2013_v42  ;;  %v2050_v31 = vmul.f32 %v2046_v48, %v2006_v52  ;;  %v4254_v28 = vld [vmem:[#allocation18_spill] sm:$0xff]  ;;  %v4265_v23 = vld [vmem:[#allocation17_spill] sm:$0xff] }
 0x73e   :  { %v2067_v15 = vsel %vm2059_vm13, %v2063_v57, %v2055_v12  ;;  %v2064_v46 = vsub.f32 0.0, %v2056_v13  ;;  %v2057_v16 = vadd.f32 %v2053_v29, %v2005_v45  ;;  %v2054_v62 = vadd.f32 %v2050_v31, %v2014_v35 }
 0x73f   :  { %v2071_v50 = vmul.f32 0.636, %v2067_v15 }
 0x740   :  { %v2068_v25 = vsel %vm2060_vm12, %v2064_v46, %v2056_v13  ;;  %v2065_v55 = vsub.f32 0.0, %v2057_v16  ;;  %v2058_v19 = vadd.f32 %v2054_v62, %v2006_v52 }
 0x741   :  { %v2075_v18 = vmul.f32 1.442695, %v2071_v50  ;;  %v2072_v51 = vmul.f32 0.636, %v2068_v25  ;;  %v2149_v37 = vadd.f32 %v2071_v50, %v4254_v28 }
 0x742   :  { %v2069_v20 = vsel %vm2061_vm10, %v2065_v55, %v2057_v16  ;;  %v2066_v33 = vsub.f32 0.0, %v2058_v19 }
 0x743   :  { %2375 = vpow2.f32 %v2075_v18  ;;  %v2077_v45 = vmul.f32 1.442695, %v2072_v51  ;;  %v2150_v2 = vadd.f32 %v2072_v51, %v4255_v39  ;;  %v2073_v43 = vmul.f32 0.636, %v2069_v20 }
 0x744   :  { %v2153_v34 = vsel %vm4256_vm14, %v2149_v37, 0.0  ;;  %v2070_v11 = vsel %vm2062_vm2, %v2066_v33, %v2058_v19 }
 0x745   :  { %2377 = vpow2.f32 %v2077_v45  ;;  %v2079_v44 = vmul.f32 1.442695, %v2073_v43  ;;  %v2154_v54 = vsel %vm4257_vm1, %v2150_v2, 0.0  ;;  %v2151_v5 = vadd.f32 %v2073_v43, %v4258_v59 }
 0x746   :  { %v2155_v10 = vadd.f32 %v2154_v54, %v2153_v34  ;;  %v2074_v52 = vmul.f32 0.636, %v2070_v11 }
 0x747   :  { %2379 = vpow2.f32 %v2079_v44  ;;  %v2167_v6 = vsel %vm4260_vm6, %v2151_v5, 0.0 }
 0x748   :  { %2156 = vadd.xlane.f32.xlu0 %v2155_v10  ;;  %v2081_v47 = vmul.f32 1.442695, %v2074_v52  ;;  %v2152_v14 = vadd.f32 %v2074_v52, %v4259_v53 }
 0x74a   :  { %2381 = vpow2.f32 %v2081_v47  ;;  %v2168_v38 = vsel %vm4261_vm8, %v2152_v14, 0.0 }
 0x74b   :  { %v2169_v61 = vadd.f32 %v2168_v38, %v2167_v6 }
 0x74d   :  { %v2376_v3 = vpop.eup %2375  ;;  %2170 = vadd.xlane.f32.xlu1 %v2169_v61 }
 0x74e   :  { %v2083_v63 = vmul.f32 %v2376_v3, %v4262_v41 }
 0x74f   :  { %v2378_v22 = vpop.eup %2377 }
 0x750   :  { %v2099_v7 = vadd.f32 %v2091_v26, %v2083_v63  ;;  %v2084_v9 = vmul.f32 %v2378_v22, %v4263_v8 }
 0x751   :  { %v2380_v36 = vpop.eup %2379 }
 0x752   :  { %v2100_v60 = vadd.f32 %v2092_v21, %v2084_v9  ;;  %v2085_v49 = vmul.f32 %v2380_v36, %v4264_v4 }
 0x754   :  { %v2130_v1 = vcombine.low %v2099_v7, %v2100_v60  ;;  %v2382_v27 = vpop.eup %2381  ;;  %v2101_v12 = vadd.f32 %v2093_v32, %v2085_v49 }
 0x755   :  { %v2086_v24 = vmul.f32 %v2382_v27, %v4265_v23 }
 0x756   :  { %v2138_v57 = vrot.slane %v2130_v1, %v4266_v56 }
 0x757   :  { %v2102_v58 = vadd.f32 %v2094_v40, %v2086_v24 }
 0x759   :  { %v2131_v42 = vcombine.low %v2101_v12, %v2102_v58 }
 0x75b   :  { %v2145_v13 = vrot.slane %v2131_v42, %v4266_v56 }
 0x75d   :  { %v2146_v17 = vcombine.low %v2138_v57, %v2145_v13 }
 0x75f   :  { %2148 = vst [vmem:[#allocation6] sm:$0xff] %v2146_v17 }
 0x760   :  { %2420 = shalt.err (!%p2417_p12)
}
 0x761   :  { %s2421_s1 = scalar_lea.hbm %s4053_s9, 128 }
 0x762   :  { %p2422_p13 = scmp.ne.s32.totalorder %s4053_s9, %s2421_s1  ;;  %p2425_p0 = scmp.lt.u32.totalorder %s2421_s1, %s4053_s9 }
 0x764   :  { %p2427_p1 = pnand %p2425_p0, %p2422_p13 }
 0x766   :  { %2430 = shalt.err (!%p2427_p1)
}
 0x767   :  { %2201 = dma.vmem_to_hbm [thread:$0]  %s2199_s28, 128, %s4053_s9, [#allocation7]  }
 0x768   :  { %s2431_s4 = scalar_lea.vmem %s2189_s30, 128  ;;  %p2436_p3 = scmp.lt.s32.totalorder %s2189_s30, %s2189_s30 }
 0x769   :  { %p2432_p2 = scmp.ne.s32.totalorder %s2189_s30, %s2431_s4  ;;  %p2437_p4 = scmp.lt.s32.totalorder %s2431_s4, %s2431_s4 }
 0x76b   :  { %p2438_p5 = por %p2437_p4, %p2436_p3 }
 0x76d   :  { %p2439_p6 = pnand %p2438_p5, %p2432_p2 }
 0x76f   :  { %2442 = shalt.err (!%p2439_p6)
}
 0x770   :  { %s2443_s23 = scalar_lea.hbm %s4052_s8, 128 }
 0x771   :  { %p2444_p7 = scmp.ne.s32.totalorder %s4052_s8, %s2443_s23  ;;  %p2447_p8 = scmp.lt.u32.totalorder %s2443_s23, %s4052_s8 }
 0x773   :  { %p2449_p9 = pnand %p2447_p8, %p2444_p7 }
 0x775   :  { %2452 = shalt.err (!%p2449_p9)
}
 0x776   :  { %2191 = dma.vmem_to_hbm [thread:$0]  %s2189_s30, 128, %s4052_s8, [#allocation4]  }
 0x777   :  { %s2499_s8 = smov [#allocation8]  }
 0x778   :  { %s2207_s6 = sshll.u32 %s2499_s8, 4  ;;  %s2208_s6 = int_to_ptr.vmem [resolvable:$true] %s2207_s6 }
 0x779   :  { %s2453_s7 = scalar_lea.vmem %s2208_s6, 32  ;;  %p2458_p11 = scmp.lt.s32.totalorder %s2208_s6, %s2208_s6 }
 0x77a   :  { %p2454_p10 = scmp.ne.s32.totalorder %s2208_s6, %s2453_s7  ;;  %p2459_p12 = scmp.lt.s32.totalorder %s2453_s7, %s2453_s7 }
 0x77c   :  { %p2460_p13 = por %p2459_p12, %p2458_p11 }
 0x77e   :  { %p2461_p0 = pnand %p2460_p13, %p2454_p10 }
 0x7d5   :  { %v2157_v0 = vpop.xlane.xlu0 %2156 }
 0x7d6   :  { %v2158_v30 = vrot.slane %v2157_v0, 4 }
 0x7d8   :  { %v2159_v29 = vadd.f32 %v2158_v30, %v2157_v0 }
 0x7da   :  { %v2160_v48 = vrot.slane %v2159_v29, 2  ;;  %v2171_v15 = vpop.xlane.xlu1 %2170 }
 0x7db   :  { %v2172_v46 = vrot.slane %v2171_v15, 4 }
 0x7dc   :  { %v2161_v16 = vadd.f32 %v2160_v48, %v2159_v29 }
 0x7dd   :  { %v2173_v31 = vadd.f32 %v2172_v46, %v2171_v15 }
 0x7de   :  { %v2162_v50 = vrot.slane %v2161_v16, 1 }
 0x7df   :  { %v2174_v35 = vrot.slane %v2173_v31, 2 }
 0x7e0   :  { %v2163_v25 = vadd.f32 %v2162_v50, %v2161_v16 }
 0x7e1   :  { %v2175_v55 = vadd.f32 %v2174_v35, %v2173_v31 }
 0x7e2   :  { %2326 = vpush %v2163_v25 }
 0x7e3   :  { %v2176_v62 = vrot.slane %v2175_v55, 1 }
 0x7e5   :  { %v2177_v18 = vadd.f32 %v2176_v62, %v2175_v55 }
 0x7e7   :  { %2328 = vpush %v2177_v18 }
 0x813   :  { %s2327_s26 = spop %2326 }
 0x814   :  { %v2165_v51 = vstv %s2327_s26 }
 0x815   :  { %2166 = vst [vmem:[#allocation8] sm:$0x1] %v2165_v51 }
 0x818   :  { %s2329_s27 = spop %2328 }
 0x819   :  { %v2179_v28 = vstv %s2329_s27 }
 0x81a   :  { %2181 = vst [vmem:[#allocation8 + $0x1] sm:$0x1] %v2179_v28 }
 0x81b   :  { %2464 = shalt.err (!%p2461_p0)
}
 0x81c   :  { %s2465_s30 = scalar_lea.hbm %s4054_s10, 32 }
 0x81d   :  { %p2466_p1 = scmp.ne.s32.totalorder %s4054_s10, %s2465_s30  ;;  %p2469_p2 = scmp.lt.u32.totalorder %s2465_s30, %s4054_s10 }
 0x81f   :  { %p2471_p3 = pnand %p2469_p2, %p2466_p1 }
 0x821   :  { %2474 = shalt.err (!%p2471_p3)
}
 0x822   :  { %2213 = dma.vmem_to_hbm [thread:$0]  %s2208_s6, 32, %s4054_s10, [#allocation7], %s2488_s13, %s2488_s13, %s2492_s16  }
 0x823   :  { %2477 = dma.done.wait [#allocation4], 128  }
 0x824   :  { %2478 = vsyncadd [#allocation4], 4294967168 }
 0x825   :  { %2479 = dma.done.wait [#allocation7], 160  }
 0x826   :  { %2480 = vsyncadd [#allocation7], 4294967136 }
 0x827   :  { %2223 = vsyncpa [#allocation3], 1 }
 0x828   :  { %2224 = vsyncpa [#allocation4], 1 }
 0x829   :  { %2225 = vsyncpa [#allocation7], 1 }

</bundles_post_ra>
